<compile_context>
chip_gen: v7x
topology: tpu7x:2x2x1
jax: 0.10.0
libtpu: 0.0.40
codegen_flags: <defaults>
</compile_context>

<pallas_src>
import jax
import jax.numpy as jnp
from jax.experimental import pallas as pl
from jax.experimental.pallas import tpu as pltpu

IN_FEATURES = 32 * 32 * 3   # 3072 (already a multiple of 128 lanes)
HIDDEN = 200
OUT_FEATURES = 10
HIDDEN_PAD = 256            # 2 full 128-lane tiles
OUT_PAD = 128               # lane-dense output slab (unmasked vst)


def _round_up(x, m):
    return ((x + m - 1) // m) * m


# ----------------------------------------------------------------------------
# Kernel
# ----------------------------------------------------------------------------
def two_fc_kernel(x_ref, w1_ref, b1_ref, w2_ref, b2_ref, o_ref):
    # Cast x to the weight compute dtype *inside* the kernel (VPU cast on the
    # already-resident VMEM tile; no extra HBM copy of x in the wrapper).
    x = x_ref[...].astype(w1_ref.dtype)
    # fc1: (TM, 3072) @ (3072, 256) on the MXU, f32 accumulation.
    h = jnp.dot(x, w1_ref[...], preferred_element_type=jnp.float32)
    # Bias add + ReLU in f32 on the VPU.  b1 padding cols are zero, so the
    # padded hidden lanes stay exactly zero through the ReLU.
    h = jnp.maximum(h + b1_ref[...], 0.0)
    # fc2: (TM, 256) @ (256, 128) -> lane-dense (TM, 128) output slab.
    y = jnp.dot(h.astype(w2_ref.dtype), w2_ref[...],
                preferred_element_type=jnp.float32)
    o_ref[...] = (y + b2_ref[...]).astype(o_ref.dtype)


# ----------------------------------------------------------------------------
# One-time parameter preparation (hoisted out of the forward pass)
# ----------------------------------------------------------------------------
def prepare_params(w1, b1, w2, b2, *, compute_dtype=jnp.bfloat16):
    """Pad feature dims to lane-dense sizes and cast weights to compute_dtype.

    Call once (e.g. at model build / weight-load time) and reuse the result
    across forward calls so the padding/cast never shows up in per-step HBM
    traffic.  Weights are stored (in, out): y = x @ W + b  (== torch x@W.T+b).
    Zero padding keeps the math exact.
    """
    w1_p = jnp.zeros((IN_FEATURES, HIDDEN_PAD), compute_dtype)
    w1_p = w1_p.at[:, :HIDDEN].set(w1.astype(compute_dtype))
    b1_p = jnp.zeros((1, HIDDEN_PAD), jnp.float32)
    b1_p = b1_p.at[:, :HIDDEN].set(b1.astype(jnp.float32))
    w2_p = jnp.zeros((HIDDEN_PAD, OUT_PAD), compute_dtype)
    w2_p = w2_p.at[:HIDDEN, :OUT_FEATURES].set(w2.astype(compute_dtype))
    b2_p = jnp.zeros((1, OUT_PAD), jnp.float32)
    b2_p = b2_p.at[:, :OUT_FEATURES].set(b2.astype(jnp.float32))
    return w1_p, b1_p, w2_p, b2_p


# ----------------------------------------------------------------------------
# Forward pass
# ----------------------------------------------------------------------------
def two_fc_forward(x, params, *, block_rows=1024,
                   vmem_limit_bytes=48 * 1024 * 1024):
    """x: (N, 3, 32, 32) -> (N, 10) float32.

    params: output of prepare_params() (pre-padded, pre-cast weights/biases).
    block_rows: batch-tile size TM.  1024 keeps the VMEM footprint ~28 MiB
    (double-buffered f32 x tile + bf16 weights + out slab), under the 48 MiB
    scoped limit on v5e / v6e / v7x.
    """
    w1_p, b1_p, w2_p, b2_p = params
    n = x.shape[0]
    x_flat = x.reshape(n, IN_FEATURES)   # == torch x.view(-1, 3072); no copy

    # ---- derive batch tile: multiple of 8 sublanes, >=4 grid steps when the
    # ---- batch is large enough (v7x has 2 TCs sharded over "parallel" axes).
    block_rows = max(8, _round_up(block_rows, 8))
    tm_cap = max(8, _round_up(pl.cdiv(n, 4), 8))
    tm = min(block_rows, tm_cap)
    grid_m = pl.cdiv(n, tm)
    n_out = grid_m * tm                  # padded output allocation only
    # No jnp.pad of x: the last (ragged) input block is a masked partial-block
    # DMA; the garbage rows it produces are sliced off below.  Rows are fully
    # independent, so this is exact for the first n rows.

    cost = pl.CostEstimate(
        flops=2 * n_out * IN_FEATURES * HIDDEN_PAD
              + 2 * n_out * HIDDEN_PAD * OUT_PAD,
        transcendentals=0,
        bytes_accessed=int(
            n * IN_FEATURES * x_flat.dtype.itemsize
            + w1_p.size * w1_p.dtype.itemsize
            + w2_p.size * w2_p.dtype.itemsize
            + (b1_p.size + b2_p.size) * 4
            + n_out * OUT_PAD * 4),
    )

    out_padded = pl.pallas_call(
        two_fc_kernel,
        out_shape=jax.ShapeDtypeStruct((n_out, OUT_PAD), jnp.float32),
        grid_spec=pltpu.PrefetchScalarGridSpec(
            num_scalar_prefetch=0,
            grid=(grid_m,),
            in_specs=[
                # x tile: streamed / double-buffered over the batch grid.
                pl.BlockSpec((tm, IN_FEATURES), lambda i: (i, 0)),
                # weights & biases: constant block -> DMA'd once, VMEM-resident.
                pl.BlockSpec((IN_FEATURES, HIDDEN_PAD), lambda i: (0, 0)),
                pl.BlockSpec((1, HIDDEN_PAD), lambda i: (0, 0)),
                pl.BlockSpec((HIDDEN_PAD, OUT_PAD), lambda i: (0, 0)),
                pl.BlockSpec((1, OUT_PAD), lambda i: (0, 0)),
            ],
            out_specs=pl.BlockSpec((tm, OUT_PAD), lambda i: (i, 0)),
        ),
        compiler_params=pltpu.CompilerParams(
            dimension_semantics=("parallel",),   # megacore sharding on v7x
            vmem_limit_bytes=vmem_limit_bytes,   # above v5e's 16 MiB default,
                                                 # within v7x's 64 MiB VMEM
        ),
        cost_estimate=cost,
    )(x_flat, w1_p, b1_p, w2_p, b2_p)

    # Drop the padded batch rows and the zero-padded output lanes.
    return out_padded[:n, :OUT_FEATURES]


# ----------------------------------------------------------------------------
# Deterministic init matching torch.nn.Linear's kaiming-uniform ranges.
# ----------------------------------------------------------------------------
def init_params(key):
    k1, k2, k3, k4 = jax.random.split(key, 4)
    bound1 = 1.0 / jnp.sqrt(IN_FEATURES)
    bound2 = 1.0 / jnp.sqrt(HIDDEN)
    w1 = jax.random.uniform(k1, (IN_FEATURES, HIDDEN), jnp.float32,
                            minval=-bound1, maxval=bound1)
    b1 = jax.random.uniform(k2, (HIDDEN,), jnp.float32,
                            minval=-bound1, maxval=bound1)
    w2 = jax.random.uniform(k3, (HIDDEN, OUT_FEATURES), jnp.float32,
                            minval=-bound2, maxval=bound2)
    b2 = jax.random.uniform(k4, (OUT_FEATURES,), jnp.float32,
                            minval=-bound2, maxval=bound2)
    return w1, b1, w2, b2


if __name__ == "__main__":
    key = jax.random.PRNGKey(0)
    kx, kp = jax.random.split(key)

    # Small batch, CIFAR-like input implied by the 32*32*3 flatten.
    x = jax.random.normal(kx, (2, 3, 32, 32), jnp.float32)
    w1, b1, w2, b2 = init_params(kp)

    # Pure-JAX reference.
    x_flat_ref = x.reshape(x.shape[0], IN_FEATURES)
    ref = jnp.maximum(x_flat_ref @ w1 + b1, 0.0) @ w2 + b2

    # Default bf16-MXU path (f32 accumulation) -- the recommended config.
    params_bf16 = prepare_params(w1, b1, w2, b2)                # one-time prep
    out = jax.block_until_ready(two_fc_forward(x, params_bf16))
    assert out.shape == (2, OUT_FEATURES)
    assert jnp.allclose(out, ref, atol=5e-2, rtol=5e-2)

    # f32 path (matches the PyTorch module's numerics).
    params_f32 = prepare_params(w1, b1, w2, b2, compute_dtype=jnp.float32)
    out_f32 = jax.block_until_ready(two_fc_forward(x, params_f32))
    assert out_f32.shape == (2, OUT_FEATURES)
    assert jnp.allclose(out_f32, ref, atol=1e-4, rtol=1e-4)

    print("KERNEL_OK")
</pallas_src>

<mosaic_0001>
module attributes {stable_mosaic.version = 11 : i64} {
  func.func @two_fc_kernel(%arg0: i32, %arg1: memref<8x3072xf32, #tpu.memory_space<vmem>>, %arg2: memref<3072x256xbf16, #tpu.memory_space<vmem>>, %arg3: memref<1x256xf32, #tpu.memory_space<vmem>>, %arg4: memref<256x128xbf16, #tpu.memory_space<vmem>>, %arg5: memref<1x128xf32, #tpu.memory_space<vmem>>, %arg6: memref<8x128xf32, #tpu.memory_space<vmem>>) attributes {dimension_semantics = [#tpu.dimension_semantics<parallel>], iteration_bounds = array<i64: 1>, scalar_prefetch = 0 : i64, scratch_operands = 0 : i64, tpu.core_type = #tpu.core_type<tc>, window_params = [{transform_indices = @transform_0, window_bounds = array<i64: 8, 3072>}, {pipeline_mode = #tpu.pipeline_mode<synchronous>, transform_indices = @transform_1, window_bounds = array<i64: 3072, 256>}, {pipeline_mode = #tpu.pipeline_mode<synchronous>, transform_indices = @transform_2, window_bounds = array<i64: 1, 256>}, {pipeline_mode = #tpu.pipeline_mode<synchronous>, transform_indices = @transform_3, window_bounds = array<i64: 256, 128>}, {pipeline_mode = #tpu.pipeline_mode<synchronous>, transform_indices = @transform_4, window_bounds = array<i64: 1, 128>}, {transform_indices = @transform_5, window_bounds = array<i64: 8, 128>}]} {
    %c0 = arith.constant 0 : index
    %c0_0 = arith.constant 0 : index
    %0 = vector.load %arg1[%c0, %c0_0] : memref<8x3072xf32, #tpu.memory_space<vmem>>, vector<8x3072xf32>
    %1 = arith.truncf %0 : vector<8x3072xf32> to vector<8x3072xbf16>
    %c0_1 = arith.constant 0 : index
    %c0_2 = arith.constant 0 : index
    %2 = vector.load %arg2[%c0_1, %c0_2] : memref<3072x256xbf16, #tpu.memory_space<vmem>>, vector<3072x256xbf16>
    %cst = arith.constant dense<0.000000e+00> : vector<8x256xf32>
    %3 = tpu.matmul %1, %2, %cst {dimension_numbers = #tpu.dot_dimension_numbers<[1], [0], [0], [1], [0, 0, 1, 1], [], []>} : vector<8x3072xbf16>, vector<3072x256xbf16>, vector<8x256xf32> -> vector<8x256xf32>
    %c0_3 = arith.constant 0 : index
    %c0_4 = arith.constant 0 : index
    %4 = vector.load %arg3[%c0_3, %c0_4] : memref<1x256xf32, #tpu.memory_space<vmem>>, vector<1x256xf32>
    %5 = vector.broadcast %4 : vector<1x256xf32> to vector<8x256xf32>
    %6 = arith.addf %3, %5 : vector<8x256xf32>
    %cst_5 = arith.constant 0.000000e+00 : f32
    %7 = vector.broadcast %cst_5 : f32 to vector<8x256xf32>
    %8 = arith.maximumf %6, %7 : vector<8x256xf32>
    %9 = arith.truncf %8 : vector<8x256xf32> to vector<8x256xbf16>
    %c0_6 = arith.constant 0 : index
    %c0_7 = arith.constant 0 : index
    %10 = vector.load %arg4[%c0_6, %c0_7] : memref<256x128xbf16, #tpu.memory_space<vmem>>, vector<256x128xbf16>
    %cst_8 = arith.constant dense<0.000000e+00> : vector<8x128xf32>
    %11 = tpu.matmul %9, %10, %cst_8 {dimension_numbers = #tpu.dot_dimension_numbers<[1], [0], [0], [1], [0, 0, 1, 1], [], []>} : vector<8x256xbf16>, vector<256x128xbf16>, vector<8x128xf32> -> vector<8x128xf32>
    %c0_9 = arith.constant 0 : index
    %c0_10 = arith.constant 0 : index
    %12 = vector.load %arg5[%c0_9, %c0_10] : memref<1x128xf32, #tpu.memory_space<vmem>>, vector<1x128xf32>
    %13 = vector.broadcast %12 : vector<1x128xf32> to vector<8x128xf32>
    %14 = arith.addf %11, %13 : vector<8x128xf32>
    %c0_11 = arith.constant 0 : index
    %c0_12 = arith.constant 0 : index
    %15 = vector.load %arg6[%c0_11, %c0_12] : memref<8x128xf32, #tpu.memory_space<vmem>>, vector<8x128xf32>
    tpu.vector_store %arg6[%c0_11, %c0_12], %14 {strides = array<i32>} : memref<8x128xf32, #tpu.memory_space<vmem>>, vector<8x128xf32>,
    return
  }
  func.func @transform_0(%arg0: i32) -> (i32, i32) {
    %c0_i32 = arith.constant 0 : i32
    %c0_i32_0 = arith.constant 0 : i32
    return %arg0, %c0_i32 : i32, i32
  }
  func.func @transform_1(%arg0: i32) -> (i32, i32) {
    %c0_i32 = arith.constant 0 : i32
    %c0_i32_0 = arith.constant 0 : i32
    %c0_i32_1 = arith.constant 0 : i32
    return %c0_i32, %c0_i32_0 : i32, i32
  }
  func.func @transform_2(%arg0: i32) -> (i32, i32) {
    %c0_i32 = arith.constant 0 : i32
    %c0_i32_0 = arith.constant 0 : i32
    %c0_i32_1 = arith.constant 0 : i32
    return %c0_i32, %c0_i32_0 : i32, i32
  }
  func.func @transform_3(%arg0: i32) -> (i32, i32) {
    %c0_i32 = arith.constant 0 : i32
    %c0_i32_0 = arith.constant 0 : i32
    %c0_i32_1 = arith.constant 0 : i32
    return %c0_i32, %c0_i32_0 : i32, i32
  }
  func.func @transform_4(%arg0: i32) -> (i32, i32) {
    %c0_i32 = arith.constant 0 : i32
    %c0_i32_0 = arith.constant 0 : i32
    %c0_i32_1 = arith.constant 0 : i32
    return %c0_i32, %c0_i32_0 : i32, i32
  }
  func.func @transform_5(%arg0: i32) -> (i32, i32) {
    %c0_i32 = arith.constant 0 : i32
    %c0_i32_0 = arith.constant 0 : i32
    return %arg0, %c0_i32 : i32, i32
  }
}

</mosaic_0001>

<bundles_post_ra>
// kernel: tpu_custom_call.1
= control target key start
LH: loop header
LB: loop body
LE: loop exit
PB: predicated region body
PF: predicated region fallthrough
CT: control target
= control target key end

     0   :  { %10 = vsyncpa [#allocation3], 0  ;;  %s4877_s0 = inlined_call_operand.hbm [shape: f32[2,3072], index: 0, kind: input, shape index: {}]   ;;  %s4878_s1 = inlined_call_operand.hbm [shape: bf16[3072,256], index: 1, kind: input, shape index: {}]   ;;  %s4879_s2 = inlined_call_operand.hbm [shape: f32[1,256], index: 2, kind: input, shape index: {}]   ;;  %s4880_s3 = inlined_call_operand.hbm [shape: bf16[256,128], index: 3, kind: input, shape index: {}]   ;;  %s4881_s4 = inlined_call_operand.hbm [shape: f32[1,128], index: 4, kind: input, shape index: {}]   ;;  %s4882_s5 = inlined_call_operand.hbm [shape: f32[8,128], index: 5, kind: output, shape index: {}]  }
   0x1   :  { %11 = vsyncpa [#allocation6], 0 }
   0x2   :  { %12 = vsyncpa [#allocation9], 0 }
   0x3   :  { %13 = vsyncpa [#allocation4], 0 }
   0x4   :  { %18 = vsyncadd [#allocation3], 2304  ;;  %s4651_s18 = smov [#allocation5]   ;;  %s4511_s22 = scalar_lea.hbm %s4878_s1, 49152 }
   0x5   :  { %s31_s19 = sshll.u32 %s4651_s18, 4  ;;  %p4512_p0 = scmp.ne.s32.totalorder %s4878_s1, %s4511_s22  ;;  %s32_s19 = int_to_ptr.vmem [resolvable:$true] %s31_s19 }
   0x6   :  { %p4515_p1 = scmp.lt.u32.totalorder %s4511_s22, %s4878_s1 }
   0x8   :  { %p4517_p2 = pnand %p4515_p1, %p4512_p0 }
   0xa   :  { %4520 = shalt.err (!%p4517_p2)
}
   0xb   :  { %s4521_s27 = scalar_lea.vmem %s32_s19, 49152  ;;  %p4526_p4 = scmp.lt.s32.totalorder %s32_s19, %s32_s19 }
   0xc   :  { %p4522_p3 = scmp.ne.s32.totalorder %s32_s19, %s4521_s27  ;;  %p4527_p5 = scmp.lt.s32.totalorder %s4521_s27, %s4521_s27 }
   0xe   :  { %p4528_p6 = por %p4527_p5, %p4526_p4 }
  0x10   :  { %p4529_p7 = pnand %p4528_p6, %p4522_p3 }
  0x12   :  { %4532 = shalt.err (!%p4529_p7)
}
  0x13   :  { %s4652_s28 = smov 128   ;;  %s4653_s29 = smov 8  }
  0x14   :  { %37 = dma.hbm_to_vmem [thread:$0]  %s4878_s1, 49152, %s32_s19, [#allocation6], %s4652_s28, %s4652_s28, %s4653_s29  }
  0x15   :  { %s4654_s7 = smov [#allocation8]   ;;  %s4533_s11 = scalar_lea.hbm %s4880_s3, 2048 }
  0x16   :  { %s53_s8 = sshll.u32 %s4654_s7, 4  ;;  %p4534_p8 = scmp.ne.s32.totalorder %s4880_s3, %s4533_s11  ;;  %s54_s8 = int_to_ptr.vmem [resolvable:$true] %s53_s8 }
  0x17   :  { %p4537_p9 = scmp.lt.u32.totalorder %s4533_s11, %s4880_s3 }
  0x19   :  { %p4539_p10 = pnand %p4537_p9, %p4534_p8 }
  0x1b   :  { %4542 = shalt.err (!%p4539_p10)
}
  0x1c   :  { %s4543_s16 = scalar_lea.vmem %s54_s8, 2048  ;;  %p4548_p12 = scmp.lt.s32.totalorder %s54_s8, %s54_s8 }
  0x1d   :  { %p4544_p11 = scmp.ne.s32.totalorder %s54_s8, %s4543_s16  ;;  %p4549_p13 = scmp.lt.s32.totalorder %s4543_s16, %s4543_s16 }
  0x1f   :  { %p4550_p0 = por %p4549_p13, %p4548_p12 }
  0x21   :  { %p4551_p1 = pnand %p4550_p0, %p4544_p11 }
  0x23   :  { %4554 = shalt.err (!%p4551_p1)
}
  0x24   :  { %s4655_s1 = smov 64   ;;  %s4656_s17 = smov 4  }
  0x25   :  { %59 = dma.hbm_to_vmem [thread:$0]  %s4880_s3, 2048, %s54_s8, [#allocation9], %s4655_s1, %s4655_s1, %s4656_s17  }
  0x26   :  { %s4657_s20 = smov [#allocation2]   ;;  %s4555_s24 = scalar_lea.hbm %s4877_s0, 768 }
  0x27   :  { %s19_s21 = sshll.u32 %s4657_s20, 4  ;;  %p4556_p2 = scmp.ne.s32.totalorder %s4877_s0, %s4555_s24  ;;  %s20_s21 = int_to_ptr.vmem [resolvable:$true] %s19_s21 }
  0x28   :  { %p4559_p3 = scmp.lt.u32.totalorder %s4555_s24, %s4877_s0 }
  0x2a   :  { %p4561_p4 = pnand %p4559_p3, %p4556_p2 }
  0x2c   :  { %4564 = shalt.err (!%p4561_p4)
}
  0x2d   :  { %s4565_s29 = scalar_lea.vmem %s20_s21, 768  ;;  %s4569_s3 = scalar_lea.vmem %s20_s21, 3072 }
  0x2e   :  { %p4566_p5 = scmp.ne.s32.totalorder %s20_s21, %s4565_s29  ;;  %p4570_p6 = scmp.lt.s32.totalorder %s20_s21, %s20_s21 }
  0x2f   :  { %p4571_p7 = scmp.lt.s32.totalorder %s4569_s3, %s4565_s29 }
  0x31   :  { %p4572_p8 = por %p4571_p7, %p4570_p6 }
  0x33   :  { %p4573_p9 = pnand %p4572_p8, %p4566_p5 }
  0x35   :  { %4576 = shalt.err (!%p4573_p9)
}
  0x36   :  { %s4658_s30 = smov 768   ;;  %s4659_s6 = smov 48  }
  0x37   :  { %25 = dma.hbm_to_vmem [thread:$0]  %s4877_s0, 768, %s20_s21, [#allocation3], %s4658_s30, %s4658_s30, %s4659_s6  }
  0x38   :  { %s4660_s9 = smov [#allocation7]   ;;  %s4661_s11 = smov [#allocation10]  }
  0x39   :  { %s44_s10 = sshll.u32 %s4660_s9, 4  ;;  %s66_s12 = sshll.u32 %s4661_s11, 4  ;;  %s45_s10 = int_to_ptr.vmem [resolvable:$true] %s44_s10  ;;  %s67_s12 = int_to_ptr.vmem [resolvable:$true] %s66_s12 }
  0x3a   :  { %s4577_s15 = scalar_lea.hbm %s4879_s2, 32 }
  0x3b   :  { %p4578_p10 = scmp.ne.s32.totalorder %s4879_s2, %s4577_s15  ;;  %p4581_p11 = scmp.lt.u32.totalorder %s4577_s15, %s4879_s2 }
  0x3d   :  { %p4583_p12 = pnand %p4581_p11, %p4578_p10 }
  0x3f   :  { %4586 = shalt.err (!%p4583_p12)
}
  0x40   :  { %s4587_s0 = scalar_lea.vmem %s45_s10, 32  ;;  %p4592_p0 = scmp.lt.s32.totalorder %s45_s10, %s45_s10 }
  0x41   :  { %p4588_p13 = scmp.ne.s32.totalorder %s45_s10, %s4587_s0  ;;  %p4593_p1 = scmp.lt.s32.totalorder %s4587_s0, %s4587_s0 }
  0x43   :  { %p4594_p2 = por %p4593_p1, %p4592_p0 }
  0x45   :  { %p4595_p3 = pnand %p4594_p2, %p4588_p13 }
  0x47   :  { %4598 = shalt.err (!%p4595_p3)
}
  0x48   :  { %47 = dma.hbm_to_vmem [thread:$0]  %s4879_s2, 32, %s45_s10, [#allocation6]  }
  0x49   :  { %s4599_s23 = scalar_lea.hbm %s4881_s4, 16 }
  0x4a   :  { %p4600_p4 = scmp.ne.s32.totalorder %s4881_s4, %s4599_s23  ;;  %p4603_p5 = scmp.lt.u32.totalorder %s4599_s23, %s4881_s4 }
  0x4c   :  { %p4605_p6 = pnand %p4603_p5, %p4600_p4 }
  0x4e   :  { %4608 = shalt.err (!%p4605_p6)
}
  0x4f   :  { %s4609_s28 = scalar_lea.vmem %s67_s12, 16  ;;  %s4613_s29 = scalar_lea.vmem %s67_s12, 32 }
  0x50   :  { %p4610_p7 = scmp.ne.s32.totalorder %s67_s12, %s4609_s28  ;;  %p4614_p8 = scmp.lt.s32.totalorder %s67_s12, %s67_s12 }
  0x51   :  { %p4615_p9 = scmp.lt.s32.totalorder %s4613_s29, %s4609_s28 }
  0x53   :  { %p4616_p10 = por %p4615_p9, %p4614_p8 }
  0x55   :  { %p4617_p11 = pnand %p4616_p10, %p4610_p7 }
  0x57   :  { %4620 = shalt.err (!%p4617_p11)
}
  0x58   :  { %69 = dma.hbm_to_vmem [thread:$0]  %s4881_s4, 16, %s67_s12, [#allocation9]  }
  0x59   :  { %4643 = dma.done.wait [#allocation3], 3072  }
  0x5a   :  { %4644 = vsyncadd [#allocation3], 4294964224 }
  0x5b   :  { %4645 = dma.done.wait [#allocation6], 49184  }
  0x5c   :  { %4646 = vsyncadd [#allocation6], 4294918112 }
  0x5d   :  { %4647 = dma.done.wait [#allocation9], 2064  }
  0x5e   :  { %4648 = vsyncadd [#allocation9], 4294965232  ;;  %v3883_v0 = vld [vmem:[#allocation5 + $0x4] ss:$8 sps:$4 sm:$0xff]   ;;  %v3887_v2 = vld [vmem:[#allocation5] ss:$8 sps:$4 sm:$0xff]   ;;  %v141_v40 = vlaneseq }
  0x5f   :  { %v3885_v1 = vld [vmem:[#allocation5 + $0x604] ss:$8 sps:$4 sm:$0xff]   ;;  %2714 = vmatprep.subr.bf16.mxu1 %v3883_v0  ;;  %v3888_v3 = vld [vmem:[#allocation5 + $0x600] ss:$8 sps:$4 sm:$0xff]   ;;  %v3889_v4 = vld [vmem:[#allocation5 + $0x14] ss:$8 sps:$4 sm:$0xff]  }
  0x60   :  { %2960 = vmatprep.subr.bf16.mxu0 %v3885_v1  ;;  %2715 = vmatpush1.bf16.msra.mxu1 %v3887_v2  ;;  %v3891_v5 = vld [vmem:[#allocation5 + $0x614] ss:$8 sps:$4 sm:$0xff]   ;;  %v3893_v6 = vld [vmem:[#allocation5 + $0x10] ss:$8 sps:$4 sm:$0xff]   ;;  %v3895_v8 = vld [vmem:[#allocation5 + $0x24] ss:$8 sps:$4 sm:$0xff]  }
  0x61   :  { %2961 = vmatpush1.bf16.msra.mxu0 %v3888_v3  ;;  %2716 = vmatprep.subr.bf16.mxu1 %v3889_v4  ;;  %v3894_v7 = vld [vmem:[#allocation5 + $0x610] ss:$8 sps:$4 sm:$0xff]   ;;  %v3897_v9 = vld [vmem:[#allocation5 + $0x624] ss:$8 sps:$4 sm:$0xff]   ;;  %v3899_v10 = vld [vmem:[#allocation5 + $0x20] ss:$8 sps:$4 sm:$0xff]  }
  0x62   :  { %2962 = vmatprep.subr.bf16.mxu0 %v3891_v5  ;;  %v3900_v11 = vld [vmem:[#allocation5 + $0x620] ss:$8 sps:$4 sm:$0xff]   ;;  %v3901_v12 = vld [vmem:[#allocation5 + $0x34] ss:$8 sps:$4 sm:$0xff]   ;;  %v3905_v14 = vld [vmem:[#allocation5 + $0x30] ss:$8 sps:$4 sm:$0xff]  }
  0x63   :  { %v3903_v13 = vld [vmem:[#allocation5 + $0x634] ss:$8 sps:$4 sm:$0xff]   ;;  %v3906_v15 = vld [vmem:[#allocation5 + $0x630] ss:$8 sps:$4 sm:$0xff]   ;;  %v3907_v16 = vld [vmem:[#allocation5 + $0x44] ss:$8 sps:$4 sm:$0xff]  }
  0x64   :  { %2717 = vmatpush1.bf16.msra.mxu1 %v3893_v6  ;;  %v3909_v17 = vld [vmem:[#allocation5 + $0x644] ss:$8 sps:$4 sm:$0xff]   ;;  %v3911_v18 = vld [vmem:[#allocation5 + $0x40] ss:$8 sps:$4 sm:$0xff]   ;;  %v3913_v20 = vld [vmem:[#allocation5 + $0x54] ss:$8 sps:$4 sm:$0xff]  }
  0x65   :  { %2963 = vmatpush1.bf16.msra.mxu0 %v3894_v7  ;;  %2718 = vmatprep.subr.bf16.mxu1 %v3895_v8  ;;  %v3912_v19 = vld [vmem:[#allocation5 + $0x640] ss:$8 sps:$4 sm:$0xff]   ;;  %v3915_v21 = vld [vmem:[#allocation5 + $0x654] ss:$8 sps:$4 sm:$0xff]   ;;  %v3917_v22 = vld [vmem:[#allocation5 + $0x50] ss:$8 sps:$4 sm:$0xff]  }
  0x66   :  { %2964 = vmatprep.subr.bf16.mxu0 %v3897_v9  ;;  %v3918_v23 = vld [vmem:[#allocation5 + $0x650] ss:$8 sps:$4 sm:$0xff]   ;;  %v3919_v24 = vld [vmem:[#allocation5 + $0x64] ss:$8 sps:$4 sm:$0xff]   ;;  %v3923_v26 = vld [vmem:[#allocation5 + $0x60] ss:$8 sps:$4 sm:$0xff]  }
  0x67   :  { %v3921_v25 = vld [vmem:[#allocation5 + $0x664] ss:$8 sps:$4 sm:$0xff]   ;;  %v3924_v27 = vld [vmem:[#allocation5 + $0x660] ss:$8 sps:$4 sm:$0xff]   ;;  %v3925_v28 = vld [vmem:[#allocation5 + $0x74] ss:$8 sps:$4 sm:$0xff]  }
  0x68   :  { %2719 = vmatpush1.bf16.msra.mxu1 %v3899_v10  ;;  %v3927_v29 = vld [vmem:[#allocation5 + $0x674] ss:$8 sps:$4 sm:$0xff]   ;;  %v3929_v30 = vld [vmem:[#allocation5 + $0x70] ss:$8 sps:$4 sm:$0xff]   ;;  %v3931_v32 = vld [vmem:[#allocation5 + $0x84] ss:$8 sps:$4 sm:$0xff]  }
  0x69   :  { %2965 = vmatpush1.bf16.msra.mxu0 %v3900_v11  ;;  %2720 = vmatprep.subr.bf16.mxu1 %v3901_v12  ;;  %v3930_v31 = vld [vmem:[#allocation5 + $0x670] ss:$8 sps:$4 sm:$0xff]   ;;  %v3933_v33 = vld [vmem:[#allocation5 + $0x684] ss:$8 sps:$4 sm:$0xff]   ;;  %v3935_v34 = vld [vmem:[#allocation5 + $0x80] ss:$8 sps:$4 sm:$0xff]  }
  0x6a   :  { %2966 = vmatprep.subr.bf16.mxu0 %v3903_v13  ;;  %v3936_v35 = vld [vmem:[#allocation5 + $0x680] ss:$8 sps:$4 sm:$0xff]   ;;  %v3937_v36 = vld [vmem:[#allocation5 + $0x94] ss:$8 sps:$4 sm:$0xff]   ;;  %v4662_v38 = vmov 1983009808  }
  0x6b   :  { %v3939_v37 = vld [vmem:[#allocation5 + $0x694] ss:$8 sps:$4 sm:$0xff]   ;;  %v139_v39 = vunpack.c.l.s4 %v4662_v38  ;;  %v3941_v41 = vld [vmem:[#allocation5 + $0x90] ss:$8 sps:$4 sm:$0xff]   ;;  %v3943_v43 = vld [vmem:[#allocation5 + $0xa4] ss:$8 sps:$4 sm:$0xff]  }
  0x6c   :  { %2721 = vmatpush1.bf16.msra.mxu1 %v3905_v14  ;;  %v3942_v42 = vld [vmem:[#allocation5 + $0x690] ss:$8 sps:$4 sm:$0xff]   ;;  %v3945_v44 = vld [vmem:[#allocation5 + $0x6a4] ss:$8 sps:$4 sm:$0xff]   ;;  %v4754_v46 = vshrl.u32 %v141_v40, 7  ;;  %s4663_s4 = smov [#allocation11]  }
  0x6d   :  { %2967 = vmatpush1.bf16.msra.mxu0 %v3906_v15  ;;  %2722 = vmatprep.subr.bf16.mxu1 %v3907_v16  ;;  %v140_v45 = vunpack.c.0.s8 %v139_v39  ;;  %v3947_v47 = vld [vmem:[#allocation5 + $0xa0] ss:$8 sps:$4 sm:$0xff]   ;;  %v3949_v49 = vld [vmem:[#allocation5 + $0xb4] ss:$8 sps:$4 sm:$0xff]   ;;  %v3953_v51 = vld [vmem:[#allocation5 + $0xb0] ss:$8 sps:$4 sm:$0xff]  }
  0x6e   :  { %2968 = vmatprep.subr.bf16.mxu0 %v3909_v17  ;;  %v3948_v48 = vld [vmem:[#allocation5 + $0x6a0] ss:$8 sps:$4 sm:$0xff]   ;;  %v3951_v50 = vld [vmem:[#allocation5 + $0x6b4] ss:$8 sps:$4 sm:$0xff]   ;;  %v3954_v52 = vld [vmem:[#allocation5 + $0x6b0] ss:$8 sps:$4 sm:$0xff]  }
  0x6f   :  { %v4757_v53 = vsub.s32 %v140_v45, %v4754_v46  ;;  %v3955_v54 = vld [vmem:[#allocation5 + $0xc4] ss:$8 sps:$4 sm:$0xff]   ;;  %v3979_v55 = vld [vmem:[#allocation2] ss:$48 sps:$4 sm:$0xff]   ;;  %v3961_v62 = vld [vmem:[#allocation5 + $0xd4] ss:$8 sps:$4 sm:$0xff]  }
  0x70   :  { %2723 = vmatpush1.bf16.msra.mxu1 %v3911_v18  ;;  %v3982_v56 = vld [vmem:[#allocation2 + $0x60] ss:$48 sps:$4 sm:$0xff]   ;;  %v3957_v57 = vld [vmem:[#allocation5 + $0x6c4] ss:$8 sps:$4 sm:$0xff]   ;;  %v3988_v0 = vld [vmem:[#allocation2 + $0x18] ss:$48 sps:$4 sm:$0xff]  }
  0x71   :  { %2969 = vmatpush1.bf16.msra.mxu0 %v3912_v19  ;;  %2724 = vmatprep.subr.bf16.mxu1 %v3913_v20  ;;  %v3959_v58 = vld [vmem:[#allocation5 + $0xc0] ss:$8 sps:$4 sm:$0xff]   ;;  %v144_v60 = vrot.slane %v3979_v55, %v4757_v53  ;;  %v158_v61 = vrot.slane %v3982_v56, %v4757_v53  ;;  %v3963_v2 = vld [vmem:[#allocation5 + $0x6d4] ss:$8 sps:$4 sm:$0xff]   ;;  %v3965_v3 = vld [vmem:[#allocation5 + $0xd0] ss:$8 sps:$4 sm:$0xff]   ;;  %v252_v6 = vrot.slane %v3988_v0, %v4757_v53 }
  0x72   :  { %2970 = vmatprep.subr.bf16.mxu0 %v3915_v21  ;;  %v3960_v59 = vld [vmem:[#allocation5 + $0x6c0] ss:$8 sps:$4 sm:$0xff]   ;;  %v3966_v4 = vld [vmem:[#allocation5 + $0x6d0] ss:$8 sps:$4 sm:$0xff]   ;;  %v3967_v8 = vld [vmem:[#allocation5 + $0xe4] ss:$8 sps:$4 sm:$0xff]  }
  0x73   :  { %v167_v63 = vcombine.high %v144_v60, %v158_v61  ;;  %v3991_v1 = vld [vmem:[#allocation2 + $0x78] ss:$48 sps:$4 sm:$0xff]   ;;  %v3969_v9 = vld [vmem:[#allocation5 + $0x6e4] ss:$8 sps:$4 sm:$0xff]   ;;  %v3973_v18 = vld [vmem:[#allocation5 + $0xf4] ss:$8 sps:$4 sm:$0xff]  }
  0x74   :  { %2725 = vmatpush1.bf16.msra.mxu1 %v3917_v22  ;;  %v266_v7 = vrot.slane %v3991_v1, %v4757_v53  ;;  %v3981_v10 = vld [vmem:[#allocation2 + $0x4] ss:$48 sps:$4 sm:$0xff]   ;;  %v3990_v13 = vld [vmem:[#allocation2 + $0x1c] ss:$48 sps:$4 sm:$0xff]   ;;  %v3971_v16 = vld [vmem:[#allocation5 + $0xe0] ss:$8 sps:$4 sm:$0xff]  }
  0x75   :  { %2971 = vmatpush1.bf16.msra.mxu0 %v3918_v23  ;;  %2726 = vmatprep.subr.bf16.mxu1 %v3919_v24  ;;  %v375_v5 = vpack.c.bf16 %v167_v63, %v167_v63  ;;  %v3984_v12 = vld [vmem:[#allocation2 + $0x64] ss:$48 sps:$4 sm:$0xff]   ;;  %v3993_v14 = vld [vmem:[#allocation2 + $0x7c] ss:$48 sps:$4 sm:$0xff]   ;;  %v3972_v17 = vld [vmem:[#allocation5 + $0x6e0] ss:$8 sps:$4 sm:$0xff]   ;;  %v4764_v20 = vrot.slane %v3981_v10, %v4757_v53  ;;  %v4770_v22 = vrot.slane %v3990_v13, %v4757_v53 }
  0x76   :  { %2972 = vmatprep.subr.bf16.mxu0 %v3921_v25  ;;  %v275_v11 = vcombine.high %v252_v6, %v266_v7  ;;  %v3975_v19 = vld [vmem:[#allocation5 + $0x6f4] ss:$8 sps:$4 sm:$0xff]   ;;  %v4767_v21 = vrot.slane %v3984_v12, %v4757_v53  ;;  %v4773_v23 = vrot.slane %v3993_v14, %v4757_v53  ;;  %v3977_v24 = vld [vmem:[#allocation5 + $0xf0] ss:$8 sps:$4 sm:$0xff]   ;;  %v4006_v45 = vld [vmem:[#allocation5 + $0x720] ss:$8 sps:$4 sm:$0xff]  }
  0x77   :  { %2746 = vmatprep.mubr.bf16.mxu1 %v375_v5  ;;  %v3978_v25 = vld [vmem:[#allocation5 + $0x6f0] ss:$8 sps:$4 sm:$0xff]   ;;  %v4018_v55 = vld [vmem:[#allocation5 + $0x740] ss:$8 sps:$4 sm:$0xff]   ;;  %v4023_v56 = vld [vmem:[#allocation5 + $0x154] ss:$8 sps:$4 sm:$0xff]  }
  0x78   :  { %2727 = vmatpush1.bf16.msra.mxu1 %v3923_v26  ;;  %v387_v15 = vpack.c.bf16 %v275_v11, %v275_v11  ;;  %v166_v26 = vcombine.low %v144_v60, %v158_v61  ;;  %v3997_v40 = vld [vmem:[#allocation5 + $0x110] ss:$8 sps:$4 sm:$0xff]   ;;  %v4029_v60 = vld [vmem:[#allocation5 + $0x164] ss:$8 sps:$4 sm:$0xff]   ;;  %v4030_v63 = vld [vmem:[#allocation5 + $0x760] ss:$8 sps:$4 sm:$0xff]  }
  0x79   :  { %2973 = vmatpush1.bf16.msra.mxu0 %v3924_v27  ;;  %2728 = vmatprep.subr.bf16.mxu1 %v3925_v28  ;;  %v274_v27 = vcombine.low %v252_v6, %v266_v7  ;;  %v3987_v28 = vld [vmem:[#allocation5 + $0x104] ss:$8 sps:$4 sm:$0xff]   ;;  %v4035_v0 = vld [vmem:[#allocation5 + $0x174] ss:$8 sps:$4 sm:$0xff]   ;;  %v4039_v6 = vld [vmem:[#allocation5 + $0x180] ss:$8 sps:$4 sm:$0xff]  }
  0x7a   :  { %2974 = vmatprep.subr.bf16.mxu0 %v3927_v29  ;;  %2992 = vmatprep.mubr.bf16.mxu0 %v387_v15  ;;  %v3996_v29 = vld [vmem:[#allocation5 + $0x704] ss:$8 sps:$4 sm:$0xff]   ;;  %v4038_v1 = vld [vmem:[#allocation5 + $0x774] ss:$8 sps:$4 sm:$0xff]   ;;  %v4042_v7 = vld [vmem:[#allocation5 + $0x780] ss:$8 sps:$4 sm:$0xff]  }
  0x7b   :  { %v4032_v61 = vld [vmem:[#allocation5 + $0x764] ss:$8 sps:$4 sm:$0xff]   ;;  %v4045_v10 = vld [vmem:[#allocation5 + $0x190] ss:$8 sps:$4 sm:$0xff]   ;;  %v4051_v14 = vld [vmem:[#allocation5 + $0x1a0] ss:$8 sps:$4 sm:$0xff]  }
  0x7c   :  { %2729 = vmatpush1.bf16.msra.mxu1 %v3929_v30  ;;  %v169_v30 = vcombine.high %v4764_v20, %v4767_v21  ;;  %v4044_v5 = vld [vmem:[#allocation5 + $0x784] ss:$8 sps:$4 sm:$0xff]   ;;  %v4048_v11 = vld [vmem:[#allocation5 + $0x790] ss:$8 sps:$4 sm:$0xff]   ;;  %v4054_v15 = vld [vmem:[#allocation5 + $0x7a0] ss:$8 sps:$4 sm:$0xff]  }
  0x7d   :  { %2975 = vmatpush1.bf16.msra.mxu0 %v3930_v31  ;;  %2730 = vmatprep.subr.bf16.mxu1 %v3931_v32  ;;  %v277_v31 = vcombine.high %v4770_v22, %v4773_v23  ;;  %v3985_v32 = vld [vmem:[#allocation5 + $0x100] ss:$8 sps:$4 sm:$0xff]   ;;  %v4053_v12 = vld [vmem:[#allocation5 + $0x1a4] ss:$8 sps:$4 sm:$0xff]   ;;  %s3392_s30 = sshll.u32 %s4663_s4, 4  ;;  %s3393_s30 = int_to_ptr.vmem [resolvable:$true] %s3392_s30 }
  0x7e   :  { %2976 = vmatprep.subr.bf16.mxu0 %v3933_v33  ;;  %v3994_v33 = vld [vmem:[#allocation5 + $0x700] ss:$8 sps:$4 sm:$0xff]   ;;  %v377_v38 = vpack.c.bf16 %v169_v30, %v169_v30  ;;  %v4056_v13 = vld [vmem:[#allocation5 + $0x7a4] ss:$8 sps:$4 sm:$0xff]   ;;  %v4069_v30 = vld [vmem:[#allocation5 + $0x1d0] ss:$8 sps:$4 sm:$0xff]   ;;  %p4626_p13 = scmp.lt.s32.totalorder %s3393_s30, %s3393_s30 }
  0x7f   :  { %v389_v39 = vpack.c.bf16 %v277_v31, %v277_v31  ;;  %v4072_v31 = vld [vmem:[#allocation5 + $0x7d0] ss:$8 sps:$4 sm:$0xff]   ;;  %s4621_s6 = scalar_lea.vmem %s3393_s30, 128 }
  0x80   :  { %2731 = vmatpush1.bf16.msra.mxu1 %v3935_v34  ;;  %v374_v34 = vpack.c.bf16 %v166_v26, %v166_v26  ;;  %v4063_v26 = vld [vmem:[#allocation5 + $0x1c0] ss:$8 sps:$4 sm:$0xff]   ;;  %p4622_p12 = scmp.ne.s32.totalorder %s3393_s30, %s4621_s6  ;;  %p4627_p0 = scmp.lt.s32.totalorder %s4621_s6, %s4621_s6 }
  0x81   :  { %2977 = vmatpush1.bf16.msra.mxu0 %v3936_v35  ;;  %2732 = vmatprep.subr.bf16.mxu1 %v3937_v36  ;;  %v386_v35 = vpack.c.bf16 %v274_v27, %v274_v27  ;;  %v3999_v36 = vld [vmem:[#allocation5 + $0x114] ss:$8 sps:$4 sm:$0xff]   ;;  %v4066_v27 = vld [vmem:[#allocation5 + $0x7c0] ss:$8 sps:$4 sm:$0xff]  }
  0x82   :  { %2978 = vmatprep.subr.bf16.mxu0 %v3939_v37  ;;  %v4002_v37 = vld [vmem:[#allocation5 + $0x714] ss:$8 sps:$4 sm:$0xff]   ;;  %p4628_p1 = por %p4627_p0, %p4626_p13 }
  0x84   :  { %2733 = vmatpush1.bf16.msra.mxu1 %v3941_v41  ;;  %v4000_v41 = vld [vmem:[#allocation5 + $0x710] ss:$8 sps:$4 sm:$0xff]   ;;  %p4629_p2 = pnand %p4628_p1, %p4622_p12 }
  0x85   :  { %2979 = vmatpush1.bf16.msra.mxu0 %v3942_v42  ;;  %2734 = vmatprep.subr.bf16.mxu1 %v3943_v43  ;;  %v4005_v42 = vld [vmem:[#allocation5 + $0x124] ss:$8 sps:$4 sm:$0xff]  }
  0x86   :  { %2980 = vmatprep.subr.bf16.mxu0 %v3945_v44  ;;  %v4008_v43 = vld [vmem:[#allocation5 + $0x724] ss:$8 sps:$4 sm:$0xff]   ;;  %v4003_v44 = vld [vmem:[#allocation5 + $0x120] ss:$8 sps:$4 sm:$0xff]  }
  0x88   :  { %2735 = vmatpush1.bf16.msra.mxu1 %v3947_v47  ;;  %v4011_v47 = vld [vmem:[#allocation5 + $0x134] ss:$8 sps:$4 sm:$0xff]  }
  0x89   :  { %2981 = vmatpush1.bf16.msra.mxu0 %v3948_v48  ;;  %2736 = vmatprep.subr.bf16.mxu1 %v3949_v49  ;;  %v4014_v48 = vld [vmem:[#allocation5 + $0x734] ss:$8 sps:$4 sm:$0xff]   ;;  %v4009_v49 = vld [vmem:[#allocation5 + $0x130] ss:$8 sps:$4 sm:$0xff]  }
  0x8a   :  { %2982 = vmatprep.subr.bf16.mxu0 %v3951_v50  ;;  %v4012_v50 = vld [vmem:[#allocation5 + $0x730] ss:$8 sps:$4 sm:$0xff]  }
  0x8c   :  { %2737 = vmatpush1.bf16.msra.mxu1 %v3953_v51  ;;  %v4017_v51 = vld [vmem:[#allocation5 + $0x144] ss:$8 sps:$4 sm:$0xff]  }
  0x8d   :  { %2983 = vmatpush1.bf16.msra.mxu0 %v3954_v52  ;;  %2738 = vmatprep.subr.bf16.mxu1 %v3955_v54  ;;  %v4020_v52 = vld [vmem:[#allocation5 + $0x744] ss:$8 sps:$4 sm:$0xff]   ;;  %v4015_v54 = vld [vmem:[#allocation5 + $0x140] ss:$8 sps:$4 sm:$0xff]  }
  0x8e   :  { %2984 = vmatprep.subr.bf16.mxu0 %v3957_v57  ;;  %v4026_v57 = vld [vmem:[#allocation5 + $0x754] ss:$8 sps:$4 sm:$0xff]  }
  0x90   :  { %2739 = vmatpush1.bf16.msra.mxu1 %v3959_v58  ;;  %v4021_v58 = vld [vmem:[#allocation5 + $0x150] ss:$8 sps:$4 sm:$0xff]  }
  0x91   :  { %2985 = vmatpush1.bf16.msra.mxu0 %v3960_v59  ;;  %2740 = vmatprep.subr.bf16.mxu1 %v3961_v62  ;;  %v4024_v59 = vld [vmem:[#allocation5 + $0x750] ss:$8 sps:$4 sm:$0xff]   ;;  %v4027_v62 = vld [vmem:[#allocation5 + $0x160] ss:$8 sps:$4 sm:$0xff]  }
  0x92   :  { %2986 = vmatprep.subr.bf16.mxu0 %v3963_v2  ;;  %v4033_v2 = vld [vmem:[#allocation5 + $0x170] ss:$8 sps:$4 sm:$0xff]  }
  0x94   :  { %2741 = vmatpush1.bf16.msra.mxu1 %v3965_v3  ;;  %v4036_v3 = vld [vmem:[#allocation5 + $0x770] ss:$8 sps:$4 sm:$0xff]  }
  0x95   :  { %2987 = vmatpush1.bf16.msra.mxu0 %v3966_v4  ;;  %2742 = vmatprep.subr.bf16.mxu1 %v3967_v8  ;;  %v4041_v4 = vld [vmem:[#allocation5 + $0x184] ss:$8 sps:$4 sm:$0xff]   ;;  %v4047_v8 = vld [vmem:[#allocation5 + $0x194] ss:$8 sps:$4 sm:$0xff]  }
  0x96   :  { %2988 = vmatprep.subr.bf16.mxu0 %v3969_v9  ;;  %v4050_v9 = vld [vmem:[#allocation5 + $0x794] ss:$8 sps:$4 sm:$0xff]  }
  0x98   :  { %2743 = vmatpush1.bf16.msra.mxu1 %v3971_v16  ;;  %v4059_v16 = vld [vmem:[#allocation5 + $0x1b4] ss:$8 sps:$4 sm:$0xff]  }
  0x99   :  { %2989 = vmatpush1.bf16.msra.mxu0 %v3972_v17  ;;  %2744 = vmatprep.subr.bf16.mxu1 %v3973_v18  ;;  %v4062_v17 = vld [vmem:[#allocation5 + $0x7b4] ss:$8 sps:$4 sm:$0xff]   ;;  %v4057_v18 = vld [vmem:[#allocation5 + $0x1b0] ss:$8 sps:$4 sm:$0xff]  }
  0x9a   :  { %2990 = vmatprep.subr.bf16.mxu0 %v3975_v19  ;;  %v4060_v19 = vld [vmem:[#allocation5 + $0x7b0] ss:$8 sps:$4 sm:$0xff]  }
  0x9c   :  { %2745 = vmatpush1.bf16.msra.mxu1 %v3977_v24  ;;  %v4065_v24 = vld [vmem:[#allocation5 + $0x1c4] ss:$8 sps:$4 sm:$0xff]  }
  0x9d   :  { %2991 = vmatpush1.bf16.msra.mxu0 %v3978_v25  ;;  %2755 = vmatprep.subr.bf16.mxu1 %v3987_v28  ;;  %v4068_v25 = vld [vmem:[#allocation5 + $0x7c4] ss:$8 sps:$4 sm:$0xff]   ;;  %v4071_v28 = vld [vmem:[#allocation5 + $0x1d4] ss:$8 sps:$4 sm:$0xff]  }
  0x9e   :  { %3001 = vmatprep.subr.bf16.mxu0 %v3996_v29  ;;  %v4074_v29 = vld [vmem:[#allocation5 + $0x7d4] ss:$8 sps:$4 sm:$0xff]  }
  0x9f   :  { %2747 = vmatmul.mubr.bf16.vlgmr.msra.gmra.mrb[0].mxu1 %v374_v34  ;;  %v4075_v34 = vld [vmem:[#allocation5 + $0x1e0] ss:$8 sps:$4 sm:$0xff]  }
  0xa0   :  { %2993 = vmatmul.mubr.bf16.vlgmr.msra.gmra.mrb[0].mxu0 %v386_v35  ;;  %2756 = vmatpush1.bf16.msra.mxu1 %v3985_v32  ;;  %v4077_v32 = vld [vmem:[#allocation5 + $0x1e4] ss:$8 sps:$4 sm:$0xff]   ;;  %v4078_v35 = vld [vmem:[#allocation5 + $0x7e0] ss:$8 sps:$4 sm:$0xff]  }
  0xa1   :  { %3002 = vmatpush1.bf16.msra.mxu0 %v3994_v33  ;;  %2757 = vmatprep.subr.bf16.mxu1 %v3999_v36  ;;  %v4080_v33 = vld [vmem:[#allocation5 + $0x7e4] ss:$8 sps:$4 sm:$0xff]   ;;  %v4083_v36 = vld [vmem:[#allocation5 + $0x1f4] ss:$8 sps:$4 sm:$0xff]  }
  0xa2   :  { %3003 = vmatprep.subr.bf16.mxu0 %v4002_v37  ;;  %2787 = vmatprep.mubr.bf16.mxu1 %v377_v38  ;;  %v4086_v37 = vld [vmem:[#allocation5 + $0x7f4] ss:$8 sps:$4 sm:$0xff]   ;;  %v4081_v38 = vld [vmem:[#allocation5 + $0x1f0] ss:$8 sps:$4 sm:$0xff]  }
  0xa3   :  { %3033 = vmatprep.mubr.bf16.mxu0 %v389_v39  ;;  %v4084_v39 = vld [vmem:[#allocation5 + $0x7f0] ss:$8 sps:$4 sm:$0xff]  }
  0xa4   :  { %2758 = vmatpush1.bf16.msra.mxu1 %v3997_v40  ;;  %v168_v40 = vcombine.low %v4764_v20, %v4767_v21  ;;  %v4093_v20 = vld [vmem:[#allocation5 + $0x210] ss:$8 sps:$4 sm:$0xff]  }
  0xa5   :  { %3004 = vmatpush1.bf16.msra.mxu0 %v4000_v41  ;;  %2759 = vmatprep.subr.bf16.mxu1 %v4005_v42  ;;  %v276_v41 = vcombine.low %v4770_v22, %v4773_v23  ;;  %v4089_v42 = vld [vmem:[#allocation5 + $0x204] ss:$8 sps:$4 sm:$0xff]   ;;  %v4096_v21 = vld [vmem:[#allocation5 + $0x810] ss:$8 sps:$4 sm:$0xff]  }
  0xa6   :  { %3005 = vmatprep.subr.bf16.mxu0 %v4008_v43  ;;  %v4092_v43 = vld [vmem:[#allocation5 + $0x804] ss:$8 sps:$4 sm:$0xff]  }
  0xa7   :  { %v4101_v22 = vld [vmem:[#allocation5 + $0x224] ss:$8 sps:$4 sm:$0xff]  }
  0xa8   :  { %2760 = vmatpush1.bf16.msra.mxu1 %v4003_v44  ;;  %v4087_v44 = vld [vmem:[#allocation5 + $0x200] ss:$8 sps:$4 sm:$0xff]   ;;  %v4104_v23 = vld [vmem:[#allocation5 + $0x824] ss:$8 sps:$4 sm:$0xff]  }
  0xa9   :  { %3006 = vmatpush1.bf16.msra.mxu0 %v4006_v45  ;;  %2761 = vmatprep.subr.bf16.mxu1 %v4011_v47  ;;  %v4090_v45 = vld [vmem:[#allocation5 + $0x800] ss:$8 sps:$4 sm:$0xff]   ;;  %v376_v47 = vpack.c.bf16 %v168_v40, %v168_v40  ;;  %v4153_v40 = vld [vmem:[#allocation5 + $0x2b0] ss:$8 sps:$4 sm:$0xff]  }
  0xaa   :  { %3007 = vmatprep.subr.bf16.mxu0 %v4014_v48  ;;  %v388_v48 = vpack.c.bf16 %v276_v41, %v276_v41  ;;  %v4156_v41 = vld [vmem:[#allocation5 + $0x8b0] ss:$8 sps:$4 sm:$0xff]  }
  0xac   :  { %2762 = vmatpush1.bf16.msra.mxu1 %v4009_v49  ;;  %v4095_v49 = vld [vmem:[#allocation5 + $0x214] ss:$8 sps:$4 sm:$0xff]  }
  0xad   :  { %3008 = vmatpush1.bf16.msra.mxu0 %v4012_v50  ;;  %2763 = vmatprep.subr.bf16.mxu1 %v4017_v51  ;;  %v4098_v50 = vld [vmem:[#allocation5 + $0x814] ss:$8 sps:$4 sm:$0xff]   ;;  %v4099_v51 = vld [vmem:[#allocation5 + $0x220] ss:$8 sps:$4 sm:$0xff]  }
  0xae   :  { %3009 = vmatprep.subr.bf16.mxu0 %v4020_v52  ;;  %v4102_v52 = vld [vmem:[#allocation5 + $0x820] ss:$8 sps:$4 sm:$0xff]  }
  0xb0   :  { %2764 = vmatpush1.bf16.msra.mxu1 %v4015_v54  ;;  %v4183_v54 = vld [vmem:[#allocation2 + $0x8] ss:$48 sps:$4 sm:$0xff]  }
  0xb1   :  { %3010 = vmatpush1.bf16.msra.mxu0 %v4018_v55  ;;  %2765 = vmatprep.subr.bf16.mxu1 %v4023_v56  ;;  %v4185_v55 = vld [vmem:[#allocation2 + $0x68] ss:$48 sps:$4 sm:$0xff]   ;;  %v4107_v56 = vld [vmem:[#allocation5 + $0x234] ss:$8 sps:$4 sm:$0xff]  }
  0xb2   :  { %3011 = vmatprep.subr.bf16.mxu0 %v4026_v57  ;;  %v4110_v57 = vld [vmem:[#allocation5 + $0x834] ss:$8 sps:$4 sm:$0xff]  }
  0xb4   :  { %2766 = vmatpush1.bf16.msra.mxu1 %v4021_v58  ;;  %v4784_v58 = vrot.slane %v4183_v54, %v4757_v53  ;;  %v4171_v54 = vld [vmem:[#allocation5 + $0x2e0] ss:$8 sps:$4 sm:$0xff]  }
  0xb5   :  { %3012 = vmatpush1.bf16.msra.mxu0 %v4024_v59  ;;  %2767 = vmatprep.subr.bf16.mxu1 %v4029_v60  ;;  %v4787_v59 = vrot.slane %v4185_v55, %v4757_v53  ;;  %v4190_v60 = vld [vmem:[#allocation2 + $0x20] ss:$48 sps:$4 sm:$0xff]  }
  0xb6   :  { %3013 = vmatprep.subr.bf16.mxu0 %v4032_v61  ;;  %v4192_v61 = vld [vmem:[#allocation2 + $0x80] ss:$48 sps:$4 sm:$0xff]  }
  0xb7   :  { %v4174_v55 = vld [vmem:[#allocation5 + $0x8e0] ss:$8 sps:$4 sm:$0xff]  }
  0xb8   :  { %2768 = vmatpush1.bf16.msra.mxu1 %v4027_v62  ;;  %v4105_v62 = vld [vmem:[#allocation5 + $0x230] ss:$8 sps:$4 sm:$0xff]  }
  0xb9   :  { %3014 = vmatpush1.bf16.msra.mxu0 %v4030_v63  ;;  %2769 = vmatprep.subr.bf16.mxu1 %v4035_v0  ;;  %v4108_v63 = vld [vmem:[#allocation5 + $0x830] ss:$8 sps:$4 sm:$0xff]   ;;  %v203_v0 = vcombine.high %v4784_v58, %v4787_v59 }
  0xba   :  { %3015 = vmatprep.subr.bf16.mxu0 %v4038_v1  ;;  %v4113_v1 = vld [vmem:[#allocation5 + $0x244] ss:$8 sps:$4 sm:$0xff]  }
  0xbc   :  { %2770 = vmatpush1.bf16.msra.mxu1 %v4033_v2  ;;  %v4792_v2 = vrot.slane %v4190_v60, %v4757_v53 }
  0xbd   :  { %3016 = vmatpush1.bf16.msra.mxu0 %v4036_v3  ;;  %2771 = vmatprep.subr.bf16.mxu1 %v4041_v4  ;;  %v4795_v3 = vrot.slane %v4192_v61, %v4757_v53  ;;  %v4116_v4 = vld [vmem:[#allocation5 + $0x844] ss:$8 sps:$4 sm:$0xff]  }
  0xbe   :  { %3017 = vmatprep.subr.bf16.mxu0 %v4044_v5  ;;  %v379_v5 = vpack.c.bf16 %v203_v0, %v203_v0  ;;  %v4177_v0 = vld [vmem:[#allocation5 + $0x2f0] ss:$8 sps:$4 sm:$0xff]  }
  0xc0   :  { %2772 = vmatpush1.bf16.msra.mxu1 %v4039_v6  ;;  %v311_v6 = vcombine.high %v4792_v2, %v4795_v3 }
  0xc1   :  { %3018 = vmatpush1.bf16.msra.mxu0 %v4042_v7  ;;  %2773 = vmatprep.subr.bf16.mxu1 %v4047_v8  ;;  %v4111_v7 = vld [vmem:[#allocation5 + $0x240] ss:$8 sps:$4 sm:$0xff]  }
  0xc2   :  { %3019 = vmatprep.subr.bf16.mxu0 %v4050_v9  ;;  %v4114_v8 = vld [vmem:[#allocation5 + $0x840] ss:$8 sps:$4 sm:$0xff]   ;;  %v4119_v9 = vld [vmem:[#allocation5 + $0x254] ss:$8 sps:$4 sm:$0xff]  }
  0xc4   :  { %2774 = vmatpush1.bf16.msra.mxu1 %v4045_v10  ;;  %v391_v10 = vpack.c.bf16 %v311_v6, %v311_v6  ;;  %v4189_v6 = vld [vmem:[#allocation5 + $0x304] ss:$8 sps:$4 sm:$0xff]  }
  0xc5   :  { %3020 = vmatpush1.bf16.msra.mxu0 %v4048_v11  ;;  %2775 = vmatprep.subr.bf16.mxu1 %v4053_v12  ;;  %v4122_v11 = vld [vmem:[#allocation5 + $0x854] ss:$8 sps:$4 sm:$0xff]   ;;  %v4117_v12 = vld [vmem:[#allocation5 + $0x250] ss:$8 sps:$4 sm:$0xff]  }
  0xc6   :  { %3021 = vmatprep.subr.bf16.mxu0 %v4056_v13  ;;  %v4120_v13 = vld [vmem:[#allocation5 + $0x850] ss:$8 sps:$4 sm:$0xff]  }
  0xc8   :  { %2776 = vmatpush1.bf16.msra.mxu1 %v4051_v14  ;;  %v4125_v14 = vld [vmem:[#allocation5 + $0x264] ss:$8 sps:$4 sm:$0xff]  }
  0xc9   :  { %3022 = vmatpush1.bf16.msra.mxu0 %v4054_v15  ;;  %2777 = vmatprep.subr.bf16.mxu1 %v4059_v16  ;;  %v4128_v15 = vld [vmem:[#allocation5 + $0x864] ss:$8 sps:$4 sm:$0xff]   ;;  %v4123_v16 = vld [vmem:[#allocation5 + $0x260] ss:$8 sps:$4 sm:$0xff]  }
  0xca   :  { %3023 = vmatprep.subr.bf16.mxu0 %v4062_v17  ;;  %v4126_v17 = vld [vmem:[#allocation5 + $0x860] ss:$8 sps:$4 sm:$0xff]  }
  0xcc   :  { %2778 = vmatpush1.bf16.msra.mxu1 %v4057_v18  ;;  %v4131_v18 = vld [vmem:[#allocation5 + $0x274] ss:$8 sps:$4 sm:$0xff]  }
  0xcd   :  { %3024 = vmatpush1.bf16.msra.mxu0 %v4060_v19  ;;  %2779 = vmatprep.subr.bf16.mxu1 %v4065_v24  ;;  %v4134_v19 = vld [vmem:[#allocation5 + $0x874] ss:$8 sps:$4 sm:$0xff]   ;;  %v4129_v24 = vld [vmem:[#allocation5 + $0x270] ss:$8 sps:$4 sm:$0xff]  }
  0xce   :  { %3025 = vmatprep.subr.bf16.mxu0 %v4068_v25  ;;  %v4132_v25 = vld [vmem:[#allocation5 + $0x870] ss:$8 sps:$4 sm:$0xff]  }
  0xd0   :  { %2780 = vmatpush1.bf16.msra.mxu1 %v4063_v26  ;;  %v4137_v26 = vld [vmem:[#allocation5 + $0x284] ss:$8 sps:$4 sm:$0xff]  }
  0xd1   :  { %3026 = vmatpush1.bf16.msra.mxu0 %v4066_v27  ;;  %2781 = vmatprep.subr.bf16.mxu1 %v4071_v28  ;;  %v4140_v27 = vld [vmem:[#allocation5 + $0x884] ss:$8 sps:$4 sm:$0xff]   ;;  %v4135_v28 = vld [vmem:[#allocation5 + $0x280] ss:$8 sps:$4 sm:$0xff]  }
  0xd2   :  { %3027 = vmatprep.subr.bf16.mxu0 %v4074_v29  ;;  %v4138_v29 = vld [vmem:[#allocation5 + $0x880] ss:$8 sps:$4 sm:$0xff]  }
  0xd4   :  { %2782 = vmatpush1.bf16.msra.mxu1 %v4069_v30  ;;  %v4143_v30 = vld [vmem:[#allocation5 + $0x294] ss:$8 sps:$4 sm:$0xff]  }
  0xd5   :  { %3028 = vmatpush1.bf16.msra.mxu0 %v4072_v31  ;;  %2783 = vmatprep.subr.bf16.mxu1 %v4077_v32  ;;  %v4146_v31 = vld [vmem:[#allocation5 + $0x894] ss:$8 sps:$4 sm:$0xff]   ;;  %v4141_v32 = vld [vmem:[#allocation5 + $0x290] ss:$8 sps:$4 sm:$0xff]  }
  0xd6   :  { %3029 = vmatprep.subr.bf16.mxu0 %v4080_v33  ;;  %v4144_v33 = vld [vmem:[#allocation5 + $0x890] ss:$8 sps:$4 sm:$0xff]  }
  0xd8   :  { %2784 = vmatpush1.bf16.msra.mxu1 %v4075_v34  ;;  %v4149_v34 = vld [vmem:[#allocation5 + $0x2a4] ss:$8 sps:$4 sm:$0xff]  }
  0xd9   :  { %3030 = vmatpush1.bf16.msra.mxu0 %v4078_v35  ;;  %2785 = vmatprep.subr.bf16.mxu1 %v4083_v36  ;;  %v4152_v35 = vld [vmem:[#allocation5 + $0x8a4] ss:$8 sps:$4 sm:$0xff]   ;;  %v4147_v36 = vld [vmem:[#allocation5 + $0x2a0] ss:$8 sps:$4 sm:$0xff]  }
  0xda   :  { %3031 = vmatprep.subr.bf16.mxu0 %v4086_v37  ;;  %v4150_v37 = vld [vmem:[#allocation5 + $0x8a0] ss:$8 sps:$4 sm:$0xff]  }
  0xdc   :  { %2786 = vmatpush1.bf16.msra.mxu1 %v4081_v38  ;;  %v4155_v38 = vld [vmem:[#allocation5 + $0x2b4] ss:$8 sps:$4 sm:$0xff]  }
  0xdd   :  { %3032 = vmatpush1.bf16.msra.mxu0 %v4084_v39  ;;  %2796 = vmatprep.subr.bf16.mxu1 %v4089_v42  ;;  %v4158_v39 = vld [vmem:[#allocation5 + $0x8b4] ss:$8 sps:$4 sm:$0xff]   ;;  %v4161_v42 = vld [vmem:[#allocation5 + $0x2c4] ss:$8 sps:$4 sm:$0xff]  }
  0xde   :  { %3042 = vmatprep.subr.bf16.mxu0 %v4092_v43  ;;  %v4164_v43 = vld [vmem:[#allocation5 + $0x8c4] ss:$8 sps:$4 sm:$0xff]  }
  0xdf   :  { %2788 = vmatmul.mubr.bf16.vlgmr.msra.gmra.mrb[0].mxu1 %v376_v47  ;;  %v4167_v47 = vld [vmem:[#allocation5 + $0x2d4] ss:$8 sps:$4 sm:$0xff]  }
  0xe0   :  { %3034 = vmatmul.mubr.bf16.vlgmr.msra.gmra.mrb[0].mxu0 %v388_v48  ;;  %2797 = vmatpush1.bf16.msra.mxu1 %v4087_v44  ;;  %v4159_v44 = vld [vmem:[#allocation5 + $0x2c0] ss:$8 sps:$4 sm:$0xff]   ;;  %v4170_v48 = vld [vmem:[#allocation5 + $0x8d4] ss:$8 sps:$4 sm:$0xff]  }
  0xe1   :  { %3043 = vmatpush1.bf16.msra.mxu0 %v4090_v45  ;;  %2798 = vmatprep.subr.bf16.mxu1 %v4095_v49  ;;  %v4162_v45 = vld [vmem:[#allocation5 + $0x8c0] ss:$8 sps:$4 sm:$0xff]   ;;  %v4165_v49 = vld [vmem:[#allocation5 + $0x2d0] ss:$8 sps:$4 sm:$0xff]  }
  0xe2   :  { %3044 = vmatprep.subr.bf16.mxu0 %v4098_v50  ;;  %2828 = vmatprep.mubr.bf16.mxu1 %v379_v5  ;;  %v4168_v50 = vld [vmem:[#allocation5 + $0x8d0] ss:$8 sps:$4 sm:$0xff]   ;;  %v310_v5 = vcombine.low %v4792_v2, %v4795_v3 }
  0xe3   :  { %3074 = vmatprep.mubr.bf16.mxu0 %v391_v10  ;;  %v4187_v10 = vld [vmem:[#allocation5 + $0x300] ss:$8 sps:$4 sm:$0xff]  }
  0xe4   :  { %2799 = vmatpush1.bf16.msra.mxu1 %v4093_v20  ;;  %v4173_v20 = vld [vmem:[#allocation5 + $0x2e4] ss:$8 sps:$4 sm:$0xff]  }
  0xe5   :  { %3045 = vmatpush1.bf16.msra.mxu0 %v4096_v21  ;;  %2800 = vmatprep.subr.bf16.mxu1 %v4101_v22  ;;  %v4176_v21 = vld [vmem:[#allocation5 + $0x8e4] ss:$8 sps:$4 sm:$0xff]  }
  0xe6   :  { %3046 = vmatprep.subr.bf16.mxu0 %v4104_v23  ;;  %v4287_v22 = vld [vmem:[#allocation2 + $0xc] ss:$48 sps:$4 sm:$0xff]  }
  0xe7   :  { %v4288_v23 = vld [vmem:[#allocation2 + $0x6c] ss:$48 sps:$4 sm:$0xff]   ;;  %v4800_v60 = vrot.slane %v4287_v22, %v4757_v53 }
  0xe8   :  { %2801 = vmatpush1.bf16.msra.mxu1 %v4099_v51  ;;  %v4292_v51 = vld [vmem:[#allocation2 + $0x24] ss:$48 sps:$4 sm:$0xff]   ;;  %v4803_v61 = vrot.slane %v4288_v23, %v4757_v53 }
  0xe9   :  { %3047 = vmatpush1.bf16.msra.mxu0 %v4102_v52  ;;  %2802 = vmatprep.subr.bf16.mxu1 %v4107_v56  ;;  %v4293_v52 = vld [vmem:[#allocation2 + $0x84] ss:$48 sps:$4 sm:$0xff]  }
  0xea   :  { %3048 = vmatprep.subr.bf16.mxu0 %v4110_v57  ;;  %v4179_v56 = vld [vmem:[#allocation5 + $0x2f4] ss:$8 sps:$4 sm:$0xff]   ;;  %v4253_v22 = vld [vmem:[#allocation5 + $0x3a4] ss:$8 sps:$4 sm:$0xff]  }
  0xeb   :  { %v4182_v57 = vld [vmem:[#allocation5 + $0x8f4] ss:$8 sps:$4 sm:$0xff]   ;;  %v4256_v23 = vld [vmem:[#allocation5 + $0x9a4] ss:$8 sps:$4 sm:$0xff]  }
  0xec   :  { %2803 = vmatpush1.bf16.msra.mxu1 %v4105_v62  ;;  %v4806_v62 = vrot.slane %v4292_v51, %v4757_v53  ;;  %v4251_v51 = vld [vmem:[#allocation5 + $0x3a0] ss:$8 sps:$4 sm:$0xff]  }
  0xed   :  { %3049 = vmatpush1.bf16.msra.mxu0 %v4108_v63  ;;  %2804 = vmatprep.subr.bf16.mxu1 %v4113_v1  ;;  %v4809_v63 = vrot.slane %v4293_v52, %v4757_v53  ;;  %v4180_v1 = vld [vmem:[#allocation5 + $0x8f0] ss:$8 sps:$4 sm:$0xff]   ;;  %v4254_v52 = vld [vmem:[#allocation5 + $0x9a0] ss:$8 sps:$4 sm:$0xff]  }
  0xee   :  { %3050 = vmatprep.subr.bf16.mxu0 %v4116_v4  ;;  %v202_v4 = vcombine.low %v4784_v58, %v4787_v59  ;;  %v4199_v58 = vld [vmem:[#allocation5 + $0x314] ss:$8 sps:$4 sm:$0xff]  }
  0xef   :  { %v4202_v59 = vld [vmem:[#allocation5 + $0x914] ss:$8 sps:$4 sm:$0xff]  }
  0xf0   :  { %2805 = vmatpush1.bf16.msra.mxu1 %v4111_v7  ;;  %v4196_v7 = vld [vmem:[#allocation5 + $0x904] ss:$8 sps:$4 sm:$0xff]  }
  0xf1   :  { %3051 = vmatpush1.bf16.msra.mxu0 %v4114_v8  ;;  %2806 = vmatprep.subr.bf16.mxu1 %v4119_v9  ;;  %v205_v8 = vcombine.high %v4800_v60, %v4803_v61  ;;  %v313_v9 = vcombine.high %v4806_v62, %v4809_v63 }
  0xf2   :  { %3052 = vmatprep.subr.bf16.mxu0 %v4122_v11  ;;  %v4194_v11 = vld [vmem:[#allocation5 + $0x900] ss:$8 sps:$4 sm:$0xff]  }
  0xf3   :  { %v381_v2 = vpack.c.bf16 %v205_v8, %v205_v8  ;;  %v393_v3 = vpack.c.bf16 %v313_v9, %v313_v9  ;;  %v4269_v8 = vld [vmem:[#allocation5 + $0x3d0] ss:$8 sps:$4 sm:$0xff]  }
  0xf4   :  { %2807 = vmatpush1.bf16.msra.mxu1 %v4117_v12  ;;  %v378_v12 = vpack.c.bf16 %v202_v4, %v202_v4  ;;  %v4263_v4 = vld [vmem:[#allocation5 + $0x3c0] ss:$8 sps:$4 sm:$0xff]   ;;  %v4272_v9 = vld [vmem:[#allocation5 + $0x9d0] ss:$8 sps:$4 sm:$0xff]  }
  0xf5   :  { %3053 = vmatpush1.bf16.msra.mxu0 %v4120_v13  ;;  %2808 = vmatprep.subr.bf16.mxu1 %v4125_v14  ;;  %v390_v13 = vpack.c.bf16 %v310_v5, %v310_v5  ;;  %v4197_v14 = vld [vmem:[#allocation5 + $0x310] ss:$8 sps:$4 sm:$0xff]   ;;  %v4266_v5 = vld [vmem:[#allocation5 + $0x9c0] ss:$8 sps:$4 sm:$0xff]  }
  0xf6   :  { %3054 = vmatprep.subr.bf16.mxu0 %v4128_v15  ;;  %v4200_v15 = vld [vmem:[#allocation5 + $0x910] ss:$8 sps:$4 sm:$0xff]  }
  0xf8   :  { %2809 = vmatpush1.bf16.msra.mxu1 %v4123_v16  ;;  %v4205_v16 = vld [vmem:[#allocation5 + $0x324] ss:$8 sps:$4 sm:$0xff]  }
  0xf9   :  { %3055 = vmatpush1.bf16.msra.mxu0 %v4126_v17  ;;  %2810 = vmatprep.subr.bf16.mxu1 %v4131_v18  ;;  %v4208_v17 = vld [vmem:[#allocation5 + $0x924] ss:$8 sps:$4 sm:$0xff]   ;;  %v4203_v18 = vld [vmem:[#allocation5 + $0x320] ss:$8 sps:$4 sm:$0xff]  }
  0xfa   :  { %3056 = vmatprep.subr.bf16.mxu0 %v4134_v19  ;;  %v4206_v19 = vld [vmem:[#allocation5 + $0x920] ss:$8 sps:$4 sm:$0xff]  }
  0xfc   :  { %2811 = vmatpush1.bf16.msra.mxu1 %v4129_v24  ;;  %v4211_v24 = vld [vmem:[#allocation5 + $0x334] ss:$8 sps:$4 sm:$0xff]  }
  0xfd   :  { %3057 = vmatpush1.bf16.msra.mxu0 %v4132_v25  ;;  %2812 = vmatprep.subr.bf16.mxu1 %v4137_v26  ;;  %v4214_v25 = vld [vmem:[#allocation5 + $0x934] ss:$8 sps:$4 sm:$0xff]   ;;  %v4209_v26 = vld [vmem:[#allocation5 + $0x330] ss:$8 sps:$4 sm:$0xff]  }
  0xfe   :  { %3058 = vmatprep.subr.bf16.mxu0 %v4140_v27  ;;  %v4212_v27 = vld [vmem:[#allocation5 + $0x930] ss:$8 sps:$4 sm:$0xff]  }
 0x100   :  { %2813 = vmatpush1.bf16.msra.mxu1 %v4135_v28  ;;  %v4217_v28 = vld [vmem:[#allocation5 + $0x344] ss:$8 sps:$4 sm:$0xff]  }
 0x101   :  { %3059 = vmatpush1.bf16.msra.mxu0 %v4138_v29  ;;  %2814 = vmatprep.subr.bf16.mxu1 %v4143_v30  ;;  %v4220_v29 = vld [vmem:[#allocation5 + $0x944] ss:$8 sps:$4 sm:$0xff]   ;;  %v4215_v30 = vld [vmem:[#allocation5 + $0x340] ss:$8 sps:$4 sm:$0xff]  }
 0x102   :  { %3060 = vmatprep.subr.bf16.mxu0 %v4146_v31  ;;  %v4218_v31 = vld [vmem:[#allocation5 + $0x940] ss:$8 sps:$4 sm:$0xff]  }
 0x104   :  { %2815 = vmatpush1.bf16.msra.mxu1 %v4141_v32  ;;  %v4223_v32 = vld [vmem:[#allocation5 + $0x354] ss:$8 sps:$4 sm:$0xff]  }
 0x105   :  { %3061 = vmatpush1.bf16.msra.mxu0 %v4144_v33  ;;  %2816 = vmatprep.subr.bf16.mxu1 %v4149_v34  ;;  %v4226_v33 = vld [vmem:[#allocation5 + $0x954] ss:$8 sps:$4 sm:$0xff]   ;;  %v4221_v34 = vld [vmem:[#allocation5 + $0x350] ss:$8 sps:$4 sm:$0xff]  }
 0x106   :  { %3062 = vmatprep.subr.bf16.mxu0 %v4152_v35  ;;  %v4224_v35 = vld [vmem:[#allocation5 + $0x950] ss:$8 sps:$4 sm:$0xff]  }
 0x108   :  { %2817 = vmatpush1.bf16.msra.mxu1 %v4147_v36  ;;  %v4229_v36 = vld [vmem:[#allocation5 + $0x364] ss:$8 sps:$4 sm:$0xff]  }
 0x109   :  { %3063 = vmatpush1.bf16.msra.mxu0 %v4150_v37  ;;  %2818 = vmatprep.subr.bf16.mxu1 %v4155_v38  ;;  %v4232_v37 = vld [vmem:[#allocation5 + $0x964] ss:$8 sps:$4 sm:$0xff]   ;;  %v4227_v38 = vld [vmem:[#allocation5 + $0x360] ss:$8 sps:$4 sm:$0xff]  }
 0x10a   :  { %3064 = vmatprep.subr.bf16.mxu0 %v4158_v39  ;;  %v4230_v39 = vld [vmem:[#allocation5 + $0x960] ss:$8 sps:$4 sm:$0xff]  }
 0x10c   :  { %2819 = vmatpush1.bf16.msra.mxu1 %v4153_v40  ;;  %v4235_v40 = vld [vmem:[#allocation5 + $0x374] ss:$8 sps:$4 sm:$0xff]  }
 0x10d   :  { %3065 = vmatpush1.bf16.msra.mxu0 %v4156_v41  ;;  %2820 = vmatprep.subr.bf16.mxu1 %v4161_v42  ;;  %v4238_v41 = vld [vmem:[#allocation5 + $0x974] ss:$8 sps:$4 sm:$0xff]   ;;  %v4233_v42 = vld [vmem:[#allocation5 + $0x370] ss:$8 sps:$4 sm:$0xff]  }
 0x10e   :  { %3066 = vmatprep.subr.bf16.mxu0 %v4164_v43  ;;  %v4236_v43 = vld [vmem:[#allocation5 + $0x970] ss:$8 sps:$4 sm:$0xff]  }
 0x110   :  { %2821 = vmatpush1.bf16.msra.mxu1 %v4159_v44  ;;  %v4241_v44 = vld [vmem:[#allocation5 + $0x384] ss:$8 sps:$4 sm:$0xff]  }
 0x111   :  { %3067 = vmatpush1.bf16.msra.mxu0 %v4162_v45  ;;  %2822 = vmatprep.subr.bf16.mxu1 %v4167_v47  ;;  %v4244_v45 = vld [vmem:[#allocation5 + $0x984] ss:$8 sps:$4 sm:$0xff]   ;;  %v4239_v47 = vld [vmem:[#allocation5 + $0x380] ss:$8 sps:$4 sm:$0xff]  }
 0x112   :  { %3068 = vmatprep.subr.bf16.mxu0 %v4170_v48  ;;  %v4242_v48 = vld [vmem:[#allocation5 + $0x980] ss:$8 sps:$4 sm:$0xff]  }
 0x114   :  { %2823 = vmatpush1.bf16.msra.mxu1 %v4165_v49  ;;  %v4247_v49 = vld [vmem:[#allocation5 + $0x394] ss:$8 sps:$4 sm:$0xff]  }
 0x115   :  { %3069 = vmatpush1.bf16.msra.mxu0 %v4168_v50  ;;  %2824 = vmatprep.subr.bf16.mxu1 %v4173_v20  ;;  %v4250_v50 = vld [vmem:[#allocation5 + $0x994] ss:$8 sps:$4 sm:$0xff]   ;;  %v4245_v20 = vld [vmem:[#allocation5 + $0x390] ss:$8 sps:$4 sm:$0xff]  }
 0x116   :  { %3070 = vmatprep.subr.bf16.mxu0 %v4176_v21  ;;  %v4248_v21 = vld [vmem:[#allocation5 + $0x990] ss:$8 sps:$4 sm:$0xff]  }
 0x118   :  { %2825 = vmatpush1.bf16.msra.mxu1 %v4171_v54  ;;  %v4259_v54 = vld [vmem:[#allocation5 + $0x3b4] ss:$8 sps:$4 sm:$0xff]  }
 0x119   :  { %3071 = vmatpush1.bf16.msra.mxu0 %v4174_v55  ;;  %2826 = vmatprep.subr.bf16.mxu1 %v4179_v56  ;;  %v4262_v55 = vld [vmem:[#allocation5 + $0x9b4] ss:$8 sps:$4 sm:$0xff]   ;;  %v4257_v56 = vld [vmem:[#allocation5 + $0x3b0] ss:$8 sps:$4 sm:$0xff]  }
 0x11a   :  { %3072 = vmatprep.subr.bf16.mxu0 %v4182_v57  ;;  %v4260_v57 = vld [vmem:[#allocation5 + $0x9b0] ss:$8 sps:$4 sm:$0xff]  }
 0x11c   :  { %2827 = vmatpush1.bf16.msra.mxu1 %v4177_v0  ;;  %v4265_v0 = vld [vmem:[#allocation5 + $0x3c4] ss:$8 sps:$4 sm:$0xff]  }
 0x11d   :  { %3073 = vmatpush1.bf16.msra.mxu0 %v4180_v1  ;;  %2837 = vmatprep.subr.bf16.mxu1 %v4189_v6  ;;  %v4268_v1 = vld [vmem:[#allocation5 + $0x9c4] ss:$8 sps:$4 sm:$0xff]   ;;  %v4271_v6 = vld [vmem:[#allocation5 + $0x3d4] ss:$8 sps:$4 sm:$0xff]  }
 0x11e   :  { %3083 = vmatprep.subr.bf16.mxu0 %v4196_v7  ;;  %v4274_v7 = vld [vmem:[#allocation5 + $0x9d4] ss:$8 sps:$4 sm:$0xff]  }
 0x11f   :  { %2829 = vmatmul.mubr.bf16.vlgmr.msra.gmra.mrb[0].mxu1 %v378_v12  ;;  %v4387_v12 = vld [vmem:[#allocation2 + $0x10] ss:$48 sps:$4 sm:$0xff]  }
 0x120   :  { %3075 = vmatmul.mubr.bf16.vlgmr.msra.gmra.mrb[0].mxu0 %v390_v13  ;;  %2838 = vmatpush1.bf16.msra.mxu1 %v4187_v10  ;;  %v4277_v10 = vld [vmem:[#allocation5 + $0x3e4] ss:$8 sps:$4 sm:$0xff]   ;;  %v4389_v13 = vld [vmem:[#allocation2 + $0x70] ss:$48 sps:$4 sm:$0xff]  }
 0x121   :  { %3084 = vmatpush1.bf16.msra.mxu0 %v4194_v11  ;;  %2839 = vmatprep.subr.bf16.mxu1 %v4199_v58  ;;  %v4280_v11 = vld [vmem:[#allocation5 + $0x9e4] ss:$8 sps:$4 sm:$0xff]   ;;  %v4394_v58 = vld [vmem:[#allocation2 + $0x28] ss:$48 sps:$4 sm:$0xff]  }
 0x122   :  { %3085 = vmatprep.subr.bf16.mxu0 %v4202_v59  ;;  %2869 = vmatprep.mubr.bf16.mxu1 %v381_v2  ;;  %v4396_v59 = vld [vmem:[#allocation2 + $0x88] ss:$48 sps:$4 sm:$0xff]  }
 0x123   :  { %3115 = vmatprep.mubr.bf16.mxu0 %v393_v3  ;;  %v4275_v2 = vld [vmem:[#allocation5 + $0x3e0] ss:$8 sps:$4 sm:$0xff]  }
 0x124   :  { %2840 = vmatpush1.bf16.msra.mxu1 %v4197_v14  ;;  %v4278_v3 = vld [vmem:[#allocation5 + $0x9e0] ss:$8 sps:$4 sm:$0xff]   ;;  %v4283_v14 = vld [vmem:[#allocation5 + $0x3f4] ss:$8 sps:$4 sm:$0xff]  }
 0x125   :  { %3086 = vmatpush1.bf16.msra.mxu0 %v4200_v15  ;;  %2841 = vmatprep.subr.bf16.mxu1 %v4205_v16  ;;  %v4286_v15 = vld [vmem:[#allocation5 + $0x9f4] ss:$8 sps:$4 sm:$0xff]   ;;  %v4820_v16 = vrot.slane %v4387_v12, %v4757_v53  ;;  %v4353_v12 = vld [vmem:[#allocation5 + $0x4a4] ss:$8 sps:$4 sm:$0xff]  }
 0x126   :  { %3087 = vmatprep.subr.bf16.mxu0 %v4208_v17  ;;  %v4823_v17 = vrot.slane %v4389_v13, %v4757_v53  ;;  %v4356_v13 = vld [vmem:[#allocation5 + $0xaa4] ss:$8 sps:$4 sm:$0xff]  }
 0x128   :  { %2842 = vmatpush1.bf16.msra.mxu1 %v4203_v18  ;;  %v4826_v18 = vrot.slane %v4394_v58, %v4757_v53  ;;  %v4351_v58 = vld [vmem:[#allocation5 + $0x4a0] ss:$8 sps:$4 sm:$0xff]  }
 0x129   :  { %3088 = vmatpush1.bf16.msra.mxu0 %v4206_v19  ;;  %2843 = vmatprep.subr.bf16.mxu1 %v4211_v24  ;;  %v4829_v19 = vrot.slane %v4396_v59, %v4757_v53  ;;  %v4281_v24 = vld [vmem:[#allocation5 + $0x3f0] ss:$8 sps:$4 sm:$0xff]   ;;  %v4354_v59 = vld [vmem:[#allocation5 + $0xaa0] ss:$8 sps:$4 sm:$0xff]  }
 0x12a   :  { %3089 = vmatprep.subr.bf16.mxu0 %v4214_v25  ;;  %v4284_v25 = vld [vmem:[#allocation5 + $0x9f0] ss:$8 sps:$4 sm:$0xff]  }
 0x12c   :  { %2844 = vmatpush1.bf16.msra.mxu1 %v4209_v26  ;;  %v204_v26 = vcombine.low %v4800_v60, %v4803_v61  ;;  %v4299_v60 = vld [vmem:[#allocation5 + $0x414] ss:$8 sps:$4 sm:$0xff]  }
 0x12d   :  { %3090 = vmatpush1.bf16.msra.mxu0 %v4212_v27  ;;  %2845 = vmatprep.subr.bf16.mxu1 %v4217_v28  ;;  %v312_v27 = vcombine.low %v4806_v62, %v4809_v63  ;;  %v4291_v28 = vld [vmem:[#allocation5 + $0x404] ss:$8 sps:$4 sm:$0xff]   ;;  %v4302_v61 = vld [vmem:[#allocation5 + $0xa14] ss:$8 sps:$4 sm:$0xff]  }
 0x12e   :  { %3091 = vmatprep.subr.bf16.mxu0 %v4220_v29  ;;  %v4296_v29 = vld [vmem:[#allocation5 + $0xa04] ss:$8 sps:$4 sm:$0xff]  }
 0x130   :  { %2846 = vmatpush1.bf16.msra.mxu1 %v4215_v30  ;;  %v239_v30 = vcombine.high %v4820_v16, %v4823_v17 }
 0x131   :  { %3092 = vmatpush1.bf16.msra.mxu0 %v4218_v31  ;;  %2847 = vmatprep.subr.bf16.mxu1 %v4223_v32  ;;  %v347_v31 = vcombine.high %v4826_v18, %v4829_v19  ;;  %v4289_v32 = vld [vmem:[#allocation5 + $0x400] ss:$8 sps:$4 sm:$0xff]  }
 0x132   :  { %3093 = vmatprep.subr.bf16.mxu0 %v4226_v33  ;;  %v4294_v33 = vld [vmem:[#allocation5 + $0xa00] ss:$8 sps:$4 sm:$0xff]   ;;  %v383_v62 = vpack.c.bf16 %v239_v30, %v239_v30  ;;  %v4369_v30 = vld [vmem:[#allocation5 + $0x4d0] ss:$8 sps:$4 sm:$0xff]  }
 0x133   :  { %v395_v63 = vpack.c.bf16 %v347_v31, %v347_v31  ;;  %v4372_v31 = vld [vmem:[#allocation5 + $0xad0] ss:$8 sps:$4 sm:$0xff]  }
 0x134   :  { %2848 = vmatpush1.bf16.msra.mxu1 %v4221_v34  ;;  %v380_v34 = vpack.c.bf16 %v204_v26, %v204_v26  ;;  %v4363_v26 = vld [vmem:[#allocation5 + $0x4c0] ss:$8 sps:$4 sm:$0xff]  }
 0x135   :  { %3094 = vmatpush1.bf16.msra.mxu0 %v4224_v35  ;;  %2849 = vmatprep.subr.bf16.mxu1 %v4229_v36  ;;  %v392_v35 = vpack.c.bf16 %v312_v27, %v312_v27  ;;  %v4297_v36 = vld [vmem:[#allocation5 + $0x410] ss:$8 sps:$4 sm:$0xff]   ;;  %v4366_v27 = vld [vmem:[#allocation5 + $0xac0] ss:$8 sps:$4 sm:$0xff]  }
 0x136   :  { %3095 = vmatprep.subr.bf16.mxu0 %v4232_v37  ;;  %v4300_v37 = vld [vmem:[#allocation5 + $0xa10] ss:$8 sps:$4 sm:$0xff]  }
 0x138   :  { %2850 = vmatpush1.bf16.msra.mxu1 %v4227_v38  ;;  %v4305_v38 = vld [vmem:[#allocation5 + $0x424] ss:$8 sps:$4 sm:$0xff]  }
 0x139   :  { %3096 = vmatpush1.bf16.msra.mxu0 %v4230_v39  ;;  %2851 = vmatprep.subr.bf16.mxu1 %v4235_v40  ;;  %v4308_v39 = vld [vmem:[#allocation5 + $0xa24] ss:$8 sps:$4 sm:$0xff]   ;;  %v4303_v40 = vld [vmem:[#allocation5 + $0x420] ss:$8 sps:$4 sm:$0xff]  }
 0x13a   :  { %3097 = vmatprep.subr.bf16.mxu0 %v4238_v41  ;;  %v4306_v41 = vld [vmem:[#allocation5 + $0xa20] ss:$8 sps:$4 sm:$0xff]  }
 0x13c   :  { %2852 = vmatpush1.bf16.msra.mxu1 %v4233_v42  ;;  %v4311_v42 = vld [vmem:[#allocation5 + $0x434] ss:$8 sps:$4 sm:$0xff]  }
 0x13d   :  { %3098 = vmatpush1.bf16.msra.mxu0 %v4236_v43  ;;  %2853 = vmatprep.subr.bf16.mxu1 %v4241_v44  ;;  %v4314_v43 = vld [vmem:[#allocation5 + $0xa34] ss:$8 sps:$4 sm:$0xff]   ;;  %v4309_v44 = vld [vmem:[#allocation5 + $0x430] ss:$8 sps:$4 sm:$0xff]  }
 0x13e   :  { %3099 = vmatprep.subr.bf16.mxu0 %v4244_v45  ;;  %v4312_v45 = vld [vmem:[#allocation5 + $0xa30] ss:$8 sps:$4 sm:$0xff]  }
 0x140   :  { %2854 = vmatpush1.bf16.msra.mxu1 %v4239_v47  ;;  %v4317_v47 = vld [vmem:[#allocation5 + $0x444] ss:$8 sps:$4 sm:$0xff]  }
 0x141   :  { %3100 = vmatpush1.bf16.msra.mxu0 %v4242_v48  ;;  %2855 = vmatprep.subr.bf16.mxu1 %v4247_v49  ;;  %v4320_v48 = vld [vmem:[#allocation5 + $0xa44] ss:$8 sps:$4 sm:$0xff]   ;;  %v4315_v49 = vld [vmem:[#allocation5 + $0x440] ss:$8 sps:$4 sm:$0xff]  }
 0x142   :  { %3101 = vmatprep.subr.bf16.mxu0 %v4250_v50  ;;  %v4318_v50 = vld [vmem:[#allocation5 + $0xa40] ss:$8 sps:$4 sm:$0xff]  }
 0x144   :  { %2856 = vmatpush1.bf16.msra.mxu1 %v4245_v20  ;;  %v4323_v20 = vld [vmem:[#allocation5 + $0x454] ss:$8 sps:$4 sm:$0xff]  }
 0x145   :  { %3102 = vmatpush1.bf16.msra.mxu0 %v4248_v21  ;;  %2857 = vmatprep.subr.bf16.mxu1 %v4253_v22  ;;  %v4326_v21 = vld [vmem:[#allocation5 + $0xa54] ss:$8 sps:$4 sm:$0xff]   ;;  %v4321_v22 = vld [vmem:[#allocation5 + $0x450] ss:$8 sps:$4 sm:$0xff]  }
 0x146   :  { %3103 = vmatprep.subr.bf16.mxu0 %v4256_v23  ;;  %v4324_v23 = vld [vmem:[#allocation5 + $0xa50] ss:$8 sps:$4 sm:$0xff]  }
 0x148   :  { %2858 = vmatpush1.bf16.msra.mxu1 %v4251_v51  ;;  %v4329_v51 = vld [vmem:[#allocation5 + $0x464] ss:$8 sps:$4 sm:$0xff]  }
 0x149   :  { %3104 = vmatpush1.bf16.msra.mxu0 %v4254_v52  ;;  %2859 = vmatprep.subr.bf16.mxu1 %v4259_v54  ;;  %v4332_v52 = vld [vmem:[#allocation5 + $0xa64] ss:$8 sps:$4 sm:$0xff]   ;;  %v4327_v54 = vld [vmem:[#allocation5 + $0x460] ss:$8 sps:$4 sm:$0xff]  }
 0x14a   :  { %3105 = vmatprep.subr.bf16.mxu0 %v4262_v55  ;;  %v4330_v55 = vld [vmem:[#allocation5 + $0xa60] ss:$8 sps:$4 sm:$0xff]  }
 0x14c   :  { %2860 = vmatpush1.bf16.msra.mxu1 %v4257_v56  ;;  %v4335_v56 = vld [vmem:[#allocation5 + $0x474] ss:$8 sps:$4 sm:$0xff]  }
 0x14d   :  { %3106 = vmatpush1.bf16.msra.mxu0 %v4260_v57  ;;  %2861 = vmatprep.subr.bf16.mxu1 %v4265_v0  ;;  %v4338_v57 = vld [vmem:[#allocation5 + $0xa74] ss:$8 sps:$4 sm:$0xff]   ;;  %v4333_v0 = vld [vmem:[#allocation5 + $0x470] ss:$8 sps:$4 sm:$0xff]  }
 0x14e   :  { %3107 = vmatprep.subr.bf16.mxu0 %v4268_v1  ;;  %v4336_v1 = vld [vmem:[#allocation5 + $0xa70] ss:$8 sps:$4 sm:$0xff]  }
 0x150   :  { %2862 = vmatpush1.bf16.msra.mxu1 %v4263_v4  ;;  %v4341_v4 = vld [vmem:[#allocation5 + $0x484] ss:$8 sps:$4 sm:$0xff]  }
 0x151   :  { %3108 = vmatpush1.bf16.msra.mxu0 %v4266_v5  ;;  %2863 = vmatprep.subr.bf16.mxu1 %v4271_v6  ;;  %v4344_v5 = vld [vmem:[#allocation5 + $0xa84] ss:$8 sps:$4 sm:$0xff]   ;;  %v4339_v6 = vld [vmem:[#allocation5 + $0x480] ss:$8 sps:$4 sm:$0xff]  }
 0x152   :  { %3109 = vmatprep.subr.bf16.mxu0 %v4274_v7  ;;  %v4342_v7 = vld [vmem:[#allocation5 + $0xa80] ss:$8 sps:$4 sm:$0xff]  }
 0x154   :  { %2864 = vmatpush1.bf16.msra.mxu1 %v4269_v8  ;;  %v4347_v8 = vld [vmem:[#allocation5 + $0x494] ss:$8 sps:$4 sm:$0xff]  }
 0x155   :  { %3110 = vmatpush1.bf16.msra.mxu0 %v4272_v9  ;;  %2865 = vmatprep.subr.bf16.mxu1 %v4277_v10  ;;  %v4350_v9 = vld [vmem:[#allocation5 + $0xa94] ss:$8 sps:$4 sm:$0xff]   ;;  %v4345_v10 = vld [vmem:[#allocation5 + $0x490] ss:$8 sps:$4 sm:$0xff]  }
 0x156   :  { %3111 = vmatprep.subr.bf16.mxu0 %v4280_v11  ;;  %v4348_v11 = vld [vmem:[#allocation5 + $0xa90] ss:$8 sps:$4 sm:$0xff]  }
 0x158   :  { %2866 = vmatpush1.bf16.msra.mxu1 %v4275_v2  ;;  %v4359_v2 = vld [vmem:[#allocation5 + $0x4b4] ss:$8 sps:$4 sm:$0xff]  }
 0x159   :  { %3112 = vmatpush1.bf16.msra.mxu0 %v4278_v3  ;;  %2867 = vmatprep.subr.bf16.mxu1 %v4283_v14  ;;  %v4362_v3 = vld [vmem:[#allocation5 + $0xab4] ss:$8 sps:$4 sm:$0xff]   ;;  %v4357_v14 = vld [vmem:[#allocation5 + $0x4b0] ss:$8 sps:$4 sm:$0xff]  }
 0x15a   :  { %3113 = vmatprep.subr.bf16.mxu0 %v4286_v15  ;;  %v4360_v15 = vld [vmem:[#allocation5 + $0xab0] ss:$8 sps:$4 sm:$0xff]  }
 0x15c   :  { %2868 = vmatpush1.bf16.msra.mxu1 %v4281_v24  ;;  %v4365_v24 = vld [vmem:[#allocation5 + $0x4c4] ss:$8 sps:$4 sm:$0xff]  }
 0x15d   :  { %3114 = vmatpush1.bf16.msra.mxu0 %v4284_v25  ;;  %2878 = vmatprep.subr.bf16.mxu1 %v4291_v28  ;;  %v4368_v25 = vld [vmem:[#allocation5 + $0xac4] ss:$8 sps:$4 sm:$0xff]   ;;  %v4371_v28 = vld [vmem:[#allocation5 + $0x4d4] ss:$8 sps:$4 sm:$0xff]  }
 0x15e   :  { %3124 = vmatprep.subr.bf16.mxu0 %v4296_v29  ;;  %v4374_v29 = vld [vmem:[#allocation5 + $0xad4] ss:$8 sps:$4 sm:$0xff]  }
 0x15f   :  { %2870 = vmatmul.mubr.bf16.vlgmr.msra.gmra.mrb[0].mxu1 %v380_v34  ;;  %v4491_v34 = vld [vmem:[#allocation2 + $0x14] ss:$48 sps:$4 sm:$0xff]  }
 0x160   :  { %3116 = vmatmul.mubr.bf16.vlgmr.msra.gmra.mrb[0].mxu0 %v392_v35  ;;  %2879 = vmatpush1.bf16.msra.mxu1 %v4289_v32  ;;  %v4377_v32 = vld [vmem:[#allocation5 + $0x4e4] ss:$8 sps:$4 sm:$0xff]  }
 0x161   :  { %3125 = vmatpush1.bf16.msra.mxu0 %v4294_v33  ;;  %2880 = vmatprep.subr.bf16.mxu1 %v4299_v60  ;;  %v4380_v33 = vld [vmem:[#allocation5 + $0xae4] ss:$8 sps:$4 sm:$0xff]  }
 0x162   :  { %3126 = vmatprep.subr.bf16.mxu0 %v4302_v61  ;;  %2910 = vmatprep.mubr.bf16.mxu1 %v383_v62  ;;  %v4492_v35 = vld [vmem:[#allocation2 + $0x74] ss:$48 sps:$4 sm:$0xff]   ;;  %v4493_v60 = vld [vmem:[#allocation2 + $0x2c] ss:$48 sps:$4 sm:$0xff]   ;;  %v4375_v62 = vld [vmem:[#allocation5 + $0x4e0] ss:$8 sps:$4 sm:$0xff]  }
 0x163   :  { %3156 = vmatprep.mubr.bf16.mxu0 %v395_v63  ;;  %v4494_v61 = vld [vmem:[#allocation2 + $0x8c] ss:$48 sps:$4 sm:$0xff]   ;;  %v4378_v63 = vld [vmem:[#allocation5 + $0xae0] ss:$8 sps:$4 sm:$0xff]  }
 0x164   :  { %2881 = vmatpush1.bf16.msra.mxu1 %v4297_v36  ;;  %v4383_v36 = vld [vmem:[#allocation5 + $0x4f4] ss:$8 sps:$4 sm:$0xff]  }
 0x165   :  { %3127 = vmatpush1.bf16.msra.mxu0 %v4300_v37  ;;  %2882 = vmatprep.subr.bf16.mxu1 %v4305_v38  ;;  %v4386_v37 = vld [vmem:[#allocation5 + $0xaf4] ss:$8 sps:$4 sm:$0xff]   ;;  %v4840_v38 = vrot.slane %v4491_v34, %v4757_v53  ;;  %v4460_v34 = vld [vmem:[#allocation5 + $0xba4] ss:$8 sps:$4 sm:$0xff]  }
 0x166   :  { %3128 = vmatprep.subr.bf16.mxu0 %v4308_v39  ;;  %v4843_v39 = vrot.slane %v4492_v35, %v4757_v53  ;;  %v4455_v35 = vld [vmem:[#allocation5 + $0x5a0] ss:$8 sps:$4 sm:$0xff]  }
 0x168   :  { %2883 = vmatpush1.bf16.msra.mxu1 %v4303_v40  ;;  %v4846_v40 = vrot.slane %v4493_v60, %v4757_v53  ;;  %v4458_v60 = vld [vmem:[#allocation5 + $0xba0] ss:$8 sps:$4 sm:$0xff]  }
 0x169   :  { %3129 = vmatpush1.bf16.msra.mxu0 %v4306_v41  ;;  %2884 = vmatprep.subr.bf16.mxu1 %v4311_v42  ;;  %v4849_v41 = vrot.slane %v4494_v61, %v4757_v53  ;;  %v238_v42 = vcombine.low %v4820_v16, %v4823_v17  ;;  %v4391_v16 = vld [vmem:[#allocation5 + $0x500] ss:$8 sps:$4 sm:$0xff]   ;;  %v4463_v61 = vld [vmem:[#allocation5 + $0x5b4] ss:$8 sps:$4 sm:$0xff]  }
 0x16a   :  { %3130 = vmatprep.subr.bf16.mxu0 %v4314_v43  ;;  %v346_v43 = vcombine.low %v4826_v18, %v4829_v19  ;;  %v4398_v17 = vld [vmem:[#allocation5 + $0xb00] ss:$8 sps:$4 sm:$0xff]   ;;  %v4403_v18 = vld [vmem:[#allocation5 + $0x514] ss:$8 sps:$4 sm:$0xff]  }
 0x16b   :  { %v349_v53 = vcombine.high %v4846_v40, %v4849_v41  ;;  %v4406_v19 = vld [vmem:[#allocation5 + $0xb14] ss:$8 sps:$4 sm:$0xff]  }
 0x16c   :  { %2885 = vmatpush1.bf16.msra.mxu1 %v4309_v44  ;;  %v4381_v44 = vld [vmem:[#allocation5 + $0x4f0] ss:$8 sps:$4 sm:$0xff]  }
 0x16d   :  { %3131 = vmatpush1.bf16.msra.mxu0 %v4312_v45  ;;  %2886 = vmatprep.subr.bf16.mxu1 %v4317_v47  ;;  %v4384_v45 = vld [vmem:[#allocation5 + $0xaf0] ss:$8 sps:$4 sm:$0xff]   ;;  %v4393_v47 = vld [vmem:[#allocation5 + $0x504] ss:$8 sps:$4 sm:$0xff]  }
 0x16e   :  { %3132 = vmatprep.subr.bf16.mxu0 %v4320_v48  ;;  %v4400_v48 = vld [vmem:[#allocation5 + $0xb04] ss:$8 sps:$4 sm:$0xff]  }
 0x170   :  { %2887 = vmatpush1.bf16.msra.mxu1 %v4315_v49  ;;  %v241_v49 = vcombine.high %v4840_v38, %v4843_v39 }
 0x171   :  { %3133 = vmatpush1.bf16.msra.mxu0 %v4318_v50  ;;  %2888 = vmatprep.subr.bf16.mxu1 %v4323_v20  ;;  %v382_v50 = vpack.c.bf16 %v238_v42, %v238_v42  ;;  %v394_v20 = vpack.c.bf16 %v346_v43, %v346_v43  ;;  %v4472_v42 = vld [vmem:[#allocation5 + $0xbc4] ss:$8 sps:$4 sm:$0xff]   ;;  %v4467_v43 = vld [vmem:[#allocation5 + $0x5c0] ss:$8 sps:$4 sm:$0xff]  }
 0x172   :  { %3134 = vmatprep.subr.bf16.mxu0 %v4326_v21  ;;  %v385_v21 = vpack.c.bf16 %v241_v49, %v241_v49  ;;  %v4476_v49 = vld [vmem:[#allocation5 + $0xbd0] ss:$8 sps:$4 sm:$0xff]  }
 0x174   :  { %2889 = vmatpush1.bf16.msra.mxu1 %v4321_v22  ;;  %v397_v22 = vpack.c.bf16 %v349_v53, %v349_v53  ;;  %v4481_v53 = vld [vmem:[#allocation5 + $0x5e4] ss:$8 sps:$4 sm:$0xff]  }
 0x175   :  { %3135 = vmatpush1.bf16.msra.mxu0 %v4324_v23  ;;  %2890 = vmatprep.subr.bf16.mxu1 %v4329_v51  ;;  %v4401_v23 = vld [vmem:[#allocation5 + $0x510] ss:$8 sps:$4 sm:$0xff]  }
 0x176   :  { %3136 = vmatprep.subr.bf16.mxu0 %v4332_v52  ;;  %v4404_v51 = vld [vmem:[#allocation5 + $0xb10] ss:$8 sps:$4 sm:$0xff]   ;;  %v4409_v52 = vld [vmem:[#allocation5 + $0x524] ss:$8 sps:$4 sm:$0xff]  }
 0x178   :  { %2891 = vmatpush1.bf16.msra.mxu1 %v4327_v54  ;;  %v4412_v54 = vld [vmem:[#allocation5 + $0xb24] ss:$8 sps:$4 sm:$0xff]  }
 0x179   :  { %3137 = vmatpush1.bf16.msra.mxu0 %v4330_v55  ;;  %2892 = vmatprep.subr.bf16.mxu1 %v4335_v56  ;;  %v4407_v55 = vld [vmem:[#allocation5 + $0x520] ss:$8 sps:$4 sm:$0xff]  }
 0x17a   :  { %3138 = vmatprep.subr.bf16.mxu0 %v4338_v57  ;;  %v4410_v56 = vld [vmem:[#allocation5 + $0xb20] ss:$8 sps:$4 sm:$0xff]   ;;  %v4415_v57 = vld [vmem:[#allocation5 + $0x534] ss:$8 sps:$4 sm:$0xff]  }
 0x17c   :  { %2893 = vmatpush1.bf16.msra.mxu1 %v4333_v0  ;;  %v4418_v0 = vld [vmem:[#allocation5 + $0xb34] ss:$8 sps:$4 sm:$0xff]  }
 0x17d   :  { %3139 = vmatpush1.bf16.msra.mxu0 %v4336_v1  ;;  %2894 = vmatprep.subr.bf16.mxu1 %v4341_v4  ;;  %v4413_v1 = vld [vmem:[#allocation5 + $0x530] ss:$8 sps:$4 sm:$0xff]  }
 0x17e   :  { %3140 = vmatprep.subr.bf16.mxu0 %v4344_v5  ;;  %v4416_v4 = vld [vmem:[#allocation5 + $0xb30] ss:$8 sps:$4 sm:$0xff]   ;;  %v4421_v5 = vld [vmem:[#allocation5 + $0x544] ss:$8 sps:$4 sm:$0xff]  }
 0x180   :  { %2895 = vmatpush1.bf16.msra.mxu1 %v4339_v6  ;;  %v4424_v6 = vld [vmem:[#allocation5 + $0xb44] ss:$8 sps:$4 sm:$0xff]  }
 0x181   :  { %3141 = vmatpush1.bf16.msra.mxu0 %v4342_v7  ;;  %2896 = vmatprep.subr.bf16.mxu1 %v4347_v8  ;;  %v4419_v7 = vld [vmem:[#allocation5 + $0x540] ss:$8 sps:$4 sm:$0xff]  }
 0x182   :  { %3142 = vmatprep.subr.bf16.mxu0 %v4350_v9  ;;  %v4422_v8 = vld [vmem:[#allocation5 + $0xb40] ss:$8 sps:$4 sm:$0xff]   ;;  %v4427_v9 = vld [vmem:[#allocation5 + $0x554] ss:$8 sps:$4 sm:$0xff]  }
 0x184   :  { %2897 = vmatpush1.bf16.msra.mxu1 %v4345_v10  ;;  %v4430_v10 = vld [vmem:[#allocation5 + $0xb54] ss:$8 sps:$4 sm:$0xff]  }
 0x185   :  { %3143 = vmatpush1.bf16.msra.mxu0 %v4348_v11  ;;  %2898 = vmatprep.subr.bf16.mxu1 %v4353_v12  ;;  %v4425_v11 = vld [vmem:[#allocation5 + $0x550] ss:$8 sps:$4 sm:$0xff]  }
 0x186   :  { %3144 = vmatprep.subr.bf16.mxu0 %v4356_v13  ;;  %v4428_v12 = vld [vmem:[#allocation5 + $0xb50] ss:$8 sps:$4 sm:$0xff]   ;;  %v4433_v13 = vld [vmem:[#allocation5 + $0x564] ss:$8 sps:$4 sm:$0xff]  }
 0x188   :  { %2899 = vmatpush1.bf16.msra.mxu1 %v4351_v58  ;;  %v4436_v58 = vld [vmem:[#allocation5 + $0xb64] ss:$8 sps:$4 sm:$0xff]  }
 0x189   :  { %3145 = vmatpush1.bf16.msra.mxu0 %v4354_v59  ;;  %2900 = vmatprep.subr.bf16.mxu1 %v4359_v2  ;;  %v4431_v59 = vld [vmem:[#allocation5 + $0x560] ss:$8 sps:$4 sm:$0xff]  }
 0x18a   :  { %3146 = vmatprep.subr.bf16.mxu0 %v4362_v3  ;;  %v4434_v2 = vld [vmem:[#allocation5 + $0xb60] ss:$8 sps:$4 sm:$0xff]   ;;  %v4439_v3 = vld [vmem:[#allocation5 + $0x574] ss:$8 sps:$4 sm:$0xff]  }
 0x18c   :  { %2901 = vmatpush1.bf16.msra.mxu1 %v4357_v14  ;;  %v4442_v14 = vld [vmem:[#allocation5 + $0xb74] ss:$8 sps:$4 sm:$0xff]  }
 0x18d   :  { %3147 = vmatpush1.bf16.msra.mxu0 %v4360_v15  ;;  %2902 = vmatprep.subr.bf16.mxu1 %v4365_v24  ;;  %v4437_v15 = vld [vmem:[#allocation5 + $0x570] ss:$8 sps:$4 sm:$0xff]  }
 0x18e   :  { %3148 = vmatprep.subr.bf16.mxu0 %v4368_v25  ;;  %v4440_v24 = vld [vmem:[#allocation5 + $0xb70] ss:$8 sps:$4 sm:$0xff]   ;;  %v4445_v25 = vld [vmem:[#allocation5 + $0x584] ss:$8 sps:$4 sm:$0xff]  }
 0x190   :  { %2903 = vmatpush1.bf16.msra.mxu1 %v4363_v26  ;;  %v4448_v26 = vld [vmem:[#allocation5 + $0xb84] ss:$8 sps:$4 sm:$0xff]  }
 0x191   :  { %3149 = vmatpush1.bf16.msra.mxu0 %v4366_v27  ;;  %2904 = vmatprep.subr.bf16.mxu1 %v4371_v28  ;;  %v4443_v27 = vld [vmem:[#allocation5 + $0x580] ss:$8 sps:$4 sm:$0xff]  }
 0x192   :  { %3150 = vmatprep.subr.bf16.mxu0 %v4374_v29  ;;  %v4446_v28 = vld [vmem:[#allocation5 + $0xb80] ss:$8 sps:$4 sm:$0xff]   ;;  %v4451_v29 = vld [vmem:[#allocation5 + $0x594] ss:$8 sps:$4 sm:$0xff]  }
 0x194   :  { %2905 = vmatpush1.bf16.msra.mxu1 %v4369_v30  ;;  %v4454_v30 = vld [vmem:[#allocation5 + $0xb94] ss:$8 sps:$4 sm:$0xff]  }
 0x195   :  { %3151 = vmatpush1.bf16.msra.mxu0 %v4372_v31  ;;  %2906 = vmatprep.subr.bf16.mxu1 %v4377_v32  ;;  %v4449_v31 = vld [vmem:[#allocation5 + $0x590] ss:$8 sps:$4 sm:$0xff]  }
 0x196   :  { %3152 = vmatprep.subr.bf16.mxu0 %v4380_v33  ;;  %v4452_v32 = vld [vmem:[#allocation5 + $0xb90] ss:$8 sps:$4 sm:$0xff]   ;;  %v4457_v33 = vld [vmem:[#allocation5 + $0x5a4] ss:$8 sps:$4 sm:$0xff]  }
 0x198   :  { %2907 = vmatpush1.bf16.msra.mxu1 %v4375_v62  ;;  %v4466_v62 = vld [vmem:[#allocation5 + $0xbb4] ss:$8 sps:$4 sm:$0xff]  }
 0x199   :  { %3153 = vmatpush1.bf16.msra.mxu0 %v4378_v63  ;;  %2908 = vmatprep.subr.bf16.mxu1 %v4383_v36  ;;  %v4461_v63 = vld [vmem:[#allocation5 + $0x5b0] ss:$8 sps:$4 sm:$0xff]  }
 0x19a   :  { %3154 = vmatprep.subr.bf16.mxu0 %v4386_v37  ;;  %v4464_v36 = vld [vmem:[#allocation5 + $0xbb0] ss:$8 sps:$4 sm:$0xff]   ;;  %v4469_v37 = vld [vmem:[#allocation5 + $0x5c4] ss:$8 sps:$4 sm:$0xff]  }
 0x19c   :  { %2909 = vmatpush1.bf16.msra.mxu1 %v4381_v44  ;;  %v4470_v44 = vld [vmem:[#allocation5 + $0xbc0] ss:$8 sps:$4 sm:$0xff]  }
 0x19d   :  { %3155 = vmatpush1.bf16.msra.mxu0 %v4384_v45  ;;  %2919 = vmatprep.subr.bf16.mxu1 %v4393_v47  ;;  %v4475_v45 = vld [vmem:[#allocation5 + $0x5d4] ss:$8 sps:$4 sm:$0xff]  }
 0x19e   :  { %3165 = vmatprep.subr.bf16.mxu0 %v4400_v48  ;;  %v4478_v47 = vld [vmem:[#allocation5 + $0xbd4] ss:$8 sps:$4 sm:$0xff]   ;;  %v4473_v48 = vld [vmem:[#allocation5 + $0x5d0] ss:$8 sps:$4 sm:$0xff]  }
 0x19f   :  { %2911 = vmatmul.mubr.bf16.vlgmr.msra.gmra.mrb[0].mxu1 %v382_v50  ;;  %v4484_v50 = vld [vmem:[#allocation5 + $0xbe4] ss:$8 sps:$4 sm:$0xff]  }
 0x1a0   :  { %3157 = vmatmul.mubr.bf16.vlgmr.msra.gmra.mrb[0].mxu0 %v394_v20  ;;  %2920 = vmatpush1.bf16.msra.mxu1 %v4391_v16  ;;  %v4479_v20 = vld [vmem:[#allocation5 + $0x5e0] ss:$8 sps:$4 sm:$0xff]  }
 0x1a1   :  { %3166 = vmatpush1.bf16.msra.mxu0 %v4398_v17  ;;  %2921 = vmatprep.subr.bf16.mxu1 %v4403_v18  ;;  %v4482_v16 = vld [vmem:[#allocation5 + $0xbe0] ss:$8 sps:$4 sm:$0xff]   ;;  %v4487_v17 = vld [vmem:[#allocation5 + $0x5f4] ss:$8 sps:$4 sm:$0xff]  }
 0x1a2   :  { %3167 = vmatprep.subr.bf16.mxu0 %v4406_v19  ;;  %2951 = vmatprep.mubr.bf16.mxu1 %v385_v21  ;;  %v4490_v18 = vld [vmem:[#allocation5 + $0xbf4] ss:$8 sps:$4 sm:$0xff]   ;;  %v240_v19 = vcombine.low %v4840_v38, %v4843_v39  ;;  %v348_v21 = vcombine.low %v4846_v40, %v4849_v41  ;;  %v4498_v38 = vld [vmem:[#allocation8 + $0x8] sm:$0xff]  }
 0x1a3   :  { %3197 = vmatprep.mubr.bf16.mxu0 %v397_v22  ;;  %v4485_v22 = vld [vmem:[#allocation5 + $0x5f0] ss:$8 sps:$4 sm:$0xff]  }
 0x1a4   :  { %2922 = vmatpush1.bf16.msra.mxu1 %v4401_v23  ;;  %v4488_v23 = vld [vmem:[#allocation5 + $0xbf0] ss:$8 sps:$4 sm:$0xff]  }
 0x1a5   :  { %3168 = vmatpush1.bf16.msra.mxu0 %v4404_v51  ;;  %2923 = vmatprep.subr.bf16.mxu1 %v4409_v52  ;;  %v4495_v51 = vld [vmem:[#allocation8 + $0x40] sm:$0xff]   ;;  %v384_v52 = vpack.c.bf16 %v240_v19, %v240_v19  ;;  %v4499_v39 = vld [vmem:[#allocation8 + $0x50] sm:$0xff]   ;;  %v4501_v41 = vld [vmem:[#allocation8 + $0x58] sm:$0xff]  }
 0x1a6   :  { %3169 = vmatprep.subr.bf16.mxu0 %v4412_v54  ;;  %v396_v54 = vpack.c.bf16 %v348_v21, %v348_v21  ;;  %v4500_v40 = vld [vmem:[#allocation8 + $0x10] sm:$0xff]  }
 0x1a8   :  { %2924 = vmatpush1.bf16.msra.mxu1 %v4407_v55  ;;  %v4496_v55 = vld [vmem:[#allocation8] sm:$0xff]  }
 0x1a9   :  { %3170 = vmatpush1.bf16.msra.mxu0 %v4410_v56  ;;  %2925 = vmatprep.subr.bf16.mxu1 %v4415_v57  ;;  %v4497_v56 = vld [vmem:[#allocation8 + $0x48] sm:$0xff]   ;;  %v4502_v57 = vld [vmem:[#allocation8 + $0x18] sm:$0xff]  }
 0x1aa   :  { %3171 = vmatprep.subr.bf16.mxu0 %v4418_v0  ;;  %v4503_v0 = vld [vmem:[#allocation8 + $0x60] sm:$0xff]  }
 0x1ac   :  { %2926 = vmatpush1.bf16.msra.mxu1 %v4413_v1  ;;  %v4504_v1 = vld [vmem:[#allocation8 + $0x20] sm:$0xff]  }
 0x1ad   :  { %3172 = vmatpush1.bf16.msra.mxu0 %v4416_v4  ;;  %2927 = vmatprep.subr.bf16.mxu1 %v4421_v5  ;;  %v4505_v4 = vld [vmem:[#allocation8 + $0x68] sm:$0xff]  }
 0x1ae   :  { %3173 = vmatprep.subr.bf16.mxu0 %v4424_v6  ;;  %v4506_v5 = vld [vmem:[#allocation8 + $0x28] sm:$0xff]   ;;  %v4507_v6 = vld [vmem:[#allocation8 + $0x70] sm:$0xff]  }
 0x1b0   :  { %2928 = vmatpush1.bf16.msra.mxu1 %v4419_v7  ;;  %v4508_v7 = vld [vmem:[#allocation8 + $0x30] sm:$0xff]  }
 0x1b1   :  { %3174 = vmatpush1.bf16.msra.mxu0 %v4422_v8  ;;  %2929 = vmatprep.subr.bf16.mxu1 %v4427_v9  ;;  %v4509_v8 = vld [vmem:[#allocation8 + $0x78] sm:$0xff]  }
 0x1b2   :  { %3175 = vmatprep.subr.bf16.mxu0 %v4430_v10  ;;  %v4510_v9 = vld [vmem:[#allocation8 + $0x38] sm:$0xff]   ;;  %v786_v10 = vsub.s32 0, %v4754_v46 }
 0x1b4   :  { %2930 = vmatpush1.bf16.msra.mxu1 %v4425_v11  ;;  %v782_v11 = vld [vmem:[#allocation7] sm:$0x3] }
 0x1b5   :  { %3176 = vmatpush1.bf16.msra.mxu0 %v4428_v12  ;;  %2931 = vmatprep.subr.bf16.mxu1 %v4433_v13  ;;  %v790_v12 = vsub.s32 1, %v4754_v46  ;;  %v787_v13 = vrot.slane %v782_v11, %v786_v10 }
 0x1b6   :  { %3177 = vmatprep.subr.bf16.mxu0 %v4436_v58 }
 0x1b7   :  { %v791_v58 = vrot.slane %v782_v11, %v790_v12 }
 0x1b8   :  { %2932 = vmatpush1.bf16.msra.mxu1 %v4431_v59 }
 0x1b9   :  { %3178 = vmatpush1.bf16.msra.mxu0 %v4434_v2  ;;  %2933 = vmatprep.subr.bf16.mxu1 %v4439_v3 }
 0x1ba   :  { %3179 = vmatprep.subr.bf16.mxu0 %v4442_v14 }
 0x1bc   :  { %2934 = vmatpush1.bf16.msra.mxu1 %v4437_v15 }
 0x1bd   :  { %3180 = vmatpush1.bf16.msra.mxu0 %v4440_v24  ;;  %2935 = vmatprep.subr.bf16.mxu1 %v4445_v25 }
 0x1be   :  { %3181 = vmatprep.subr.bf16.mxu0 %v4448_v26 }
 0x1c0   :  { %2936 = vmatpush1.bf16.msra.mxu1 %v4443_v27 }
 0x1c1   :  { %3182 = vmatpush1.bf16.msra.mxu0 %v4446_v28  ;;  %2937 = vmatprep.subr.bf16.mxu1 %v4451_v29 }
 0x1c2   :  { %3183 = vmatprep.subr.bf16.mxu0 %v4454_v30 }
 0x1c4   :  { %2938 = vmatpush1.bf16.msra.mxu1 %v4449_v31 }
 0x1c5   :  { %3184 = vmatpush1.bf16.msra.mxu0 %v4452_v32  ;;  %2939 = vmatprep.subr.bf16.mxu1 %v4457_v33 }
 0x1c6   :  { %3185 = vmatprep.subr.bf16.mxu0 %v4460_v34 }
 0x1c8   :  { %2940 = vmatpush1.bf16.msra.mxu1 %v4455_v35  ;;  %v3787_v35 = vld [vmem:[#allocation10] ss:$0 sm:$0xff] }
 0x1c9   :  { %3186 = vmatpush1.bf16.msra.mxu0 %v4458_v60  ;;  %2941 = vmatprep.subr.bf16.mxu1 %v4463_v61 }
 0x1ca   :  { %3187 = vmatprep.subr.bf16.mxu0 %v4466_v62 }
 0x1cc   :  { %2942 = vmatpush1.bf16.msra.mxu1 %v4461_v63 }
 0x1cd   :  { %3188 = vmatpush1.bf16.msra.mxu0 %v4464_v36  ;;  %2943 = vmatprep.subr.bf16.mxu1 %v4469_v37 }
 0x1ce   :  { %3189 = vmatprep.subr.bf16.mxu0 %v4472_v42 }
 0x1d0   :  { %2944 = vmatpush1.bf16.msra.mxu1 %v4467_v43 }
 0x1d1   :  { %3190 = vmatpush1.bf16.msra.mxu0 %v4470_v44  ;;  %2945 = vmatprep.subr.bf16.mxu1 %v4475_v45 }
 0x1d2   :  { %3191 = vmatprep.subr.bf16.mxu0 %v4478_v47 }
 0x1d4   :  { %2946 = vmatpush1.bf16.msra.mxu1 %v4473_v48 }
 0x1d5   :  { %3192 = vmatpush1.bf16.msra.mxu0 %v4476_v49  ;;  %2947 = vmatprep.subr.bf16.mxu1 %v4481_v53 }
 0x1d6   :  { %3193 = vmatprep.subr.bf16.mxu0 %v4484_v50 }
 0x1d8   :  { %2948 = vmatpush1.bf16.msra.mxu1 %v4479_v20 }
 0x1d9   :  { %3194 = vmatpush1.bf16.msra.mxu0 %v4482_v16  ;;  %2949 = vmatprep.subr.bf16.mxu1 %v4487_v17 }
 0x1da   :  { %3195 = vmatprep.subr.bf16.mxu0 %v4490_v18 }
 0x1dc   :  { %2950 = vmatpush1.bf16.msra.mxu1 %v4485_v22 }
 0x1dd   :  { %3196 = vmatpush1.bf16.msra.mxu0 %v4488_v23  ;;  %3804 = vmatprep.subr.bf16.mxu1 %v4495_v51 }
 0x1df   :  { %2952 = vmatmul.mubr.bf16.vlgmr.msra.gmra.mrb[0].mxu1 %v384_v52 }
 0x1e0   :  { %3198 = vmatmul.mubr.bf16.vlgmr.msra.gmra.mrb[0].mxu0 %v396_v54  ;;  %3805 = vmatpush3.bf16.msra.mxu1 %v4496_v55 }
 0x1e1   :  { %3806 = vmatprep.subr.bf16.mxu1 %v4497_v56 }
 0x1e4   :  { %3807 = vmatpush3.bf16.msra.mxu1 %v4498_v38 }
 0x1e5   :  { %3808 = vmatprep.subr.bf16.mxu1 %v4499_v39 }
 0x1e8   :  { %3809 = vmatpush3.bf16.msra.mxu1 %v4500_v40 }
 0x1e9   :  { %3810 = vmatprep.subr.bf16.mxu1 %v4501_v41 }
 0x1ec   :  { %3811 = vmatpush3.bf16.msra.mxu1 %v4502_v57 }
 0x1ed   :  { %3812 = vmatprep.subr.bf16.mxu1 %v4503_v0 }
 0x1f0   :  { %3813 = vmatpush3.bf16.msra.mxu1 %v4504_v1 }
 0x1f1   :  { %3814 = vmatprep.subr.bf16.mxu1 %v4505_v4 }
 0x1f4   :  { %3815 = vmatpush3.bf16.msra.mxu1 %v4506_v5 }
 0x1f5   :  { %3816 = vmatprep.subr.bf16.mxu1 %v4507_v6 }
 0x1f8   :  { %3817 = vmatpush3.bf16.msra.mxu1 %v4508_v7 }
 0x1f9   :  { %3818 = vmatprep.subr.bf16.mxu1 %v4509_v8 }
 0x1fc   :  { %3819 = vmatpush3.bf16.msra.mxu1 %v4510_v9 }
 0x2b2   :  { %v2953_v59 = vpop.f32.mrb[0].mxu1 }
 0x2b3   :  { %v3199_v2 = vpop.f32.mrb[0].mxu0  ;;  %v3826_v3 = vadd.f32 %v2953_v59, %v787_v13  ;;  %v2955_v14 = vpop.f32.mrb[1].mxu1 }
 0x2b4   :  { %v3201_v15 = vpop.f32.mrb[1].mxu0  ;;  %v3828_v24 = vadd.f32 %v2955_v14, %v791_v58  ;;  %v2957_v25 = vpop.f32.mrb[2].mxu1 }
 0x2b5   :  { %v3203_v26 = vpop.f32.mrb[2].mxu0  ;;  %v3827_v27 = vadd.f32 %v3826_v3, %v3199_v2  ;;  %v2958_v28 = vpop.f32.mrb[3].mxu1 }
 0x2b6   :  { %v3204_v29 = vpop.f32.mrb[3].mxu0  ;;  %v3829_v30 = vadd.f32 %v3828_v24, %v3201_v15 }
 0x2b7   :  { %v3206_v31 = vmax.f32 %v3827_v27, 0.0 }
 0x2b8   :  { %v3207_v32 = vmax.f32 %v3829_v30, 0.0 }
 0x2b9   :  { %v3208_v34 = vpack.c.bf16 %v3206_v31, %v3206_v31 }
 0x2ba   :  { %v3209_v33 = vpack.c.bf16 %v3207_v32, %v3207_v32 }
 0x2bc   :  { %3377 = vmatprep.mubr.bf16.mxu1 %v3209_v33 }
 0x2bd   :  { %3378 = vmatmul.mubr.bf16.vlgmr.msra.gmra.mrb[4].mxu1 %v3208_v34 }
 0x390   :  { %v3820_v46 = vpop.f32.mrb[4].mxu1 }
 0x391   :  { %v3821_v60 = vpop.f32.mrb[5].mxu1 }
 0x392   :  { %v3822_v61 = vadd.f32 %v3821_v60, %v3820_v46  ;;  %v3823_v62 = vpop.f32.mrb[6].mxu1 }
 0x393   :  { %v3824_v63 = vpop.f32.mrb[7].mxu1 }
 0x394   :  { %v3380_v36 = vadd.f32 %v3822_v61, %v3787_v35 }
 0x396   :  { %3385 = vst [vmem:[#allocation11] sm:$0xff] %v3380_v36 }
 0x397   :  { %4632 = shalt.err (!%p4629_p2)
}
 0x398   :  { %s4633_s9 = scalar_lea.hbm %s4882_s5, 128 }
 0x399   :  { %p4634_p3 = scmp.ne.s32.totalorder %s4882_s5, %s4633_s9  ;;  %p4637_p4 = scmp.lt.u32.totalorder %s4633_s9, %s4882_s5 }
 0x39b   :  { %p4639_p5 = pnand %p4637_p4, %p4634_p3 }
 0x39d   :  { %4642 = shalt.err (!%p4639_p5)
}
 0x39e   :  { %3395 = dma.vmem_to_hbm [thread:$0]  %s3393_s30, 128, %s4882_s5, [#allocation4]  }
 0x39f   :  { %4649 = dma.done.wait [#allocation4], 128  }
 0x3a0   :  { %4650 = vsyncadd [#allocation4], 4294967168 }
 0x3a1   :  { %3399 = vsyncpa [#allocation3], 1 }
 0x3a2   :  { %3400 = vsyncpa [#allocation6], 1 }
 0x3a3   :  { %3401 = vsyncpa [#allocation9], 1 }
 0x3a4   :  { %3402 = vsyncpa [#allocation4], 1 }

</bundles_post_ra>
